<compile_context>
chip_gen: v7x
topology: tpu7x:2x2x1
jax: 0.10.0
libtpu: 0.0.40
codegen_flags: <defaults>
</compile_context>

<pallas_src>
import functools

import jax
import jax.numpy as jnp
from jax.experimental import pallas as pl
from jax.experimental.pallas import tpu as pltpu

# ----------------------------- config (module hyper-params) ------------------
MAX_FEATURES = 12000     # module-level constant in the PyTorch file
EMBED_SIZE   = 300       # module-level constant in the PyTorch file
HIDDEN_SIZE  = 32
N_CLASSES    = 4
DROPOUT_P    = 0.1       # inference-mode dropout == identity
BATCH        = 2
SEQ_LEN      = 8


# ----------------------------- fused Pallas kernel ----------------------------
def bilstm_fused_kernel(x_ref, wi_ref, whf_ref, whb_ref, bf_ref, bb_ref,
                        w1_ref, b1_ref, w2_ref, b2_ref, out_ref):
    """Entire BiLSTM forward pass in one kernel invocation.

    x_ref  : (T*B, E)   time-major flattened embeddings (row t*B+b == x[t, b])
    wi_ref : (E, 8H)    [W_ih_fwd^T | W_ih_bwd^T], gate order i,f,g,o per dir
    whf/whb: (H, 4H)    recurrent weights (transposed), gate order i,f,g,o
    bf/bb  : (1, 4H)    b_ih + b_hh per direction
    w1/b1  : (4H, H),(1, H)   Linear(hidden*4 -> hidden)
    w2/b2  : (H, C),(1, C)    Linear(hidden -> n_classes)
    out_ref: (B, C)
    """
    B, C = out_ref.shape
    H = whf_ref.shape[0]
    TB = x_ref.shape[0]
    T = TB // B
    G = 4 * H

    # ---- hoisted input projection: one big MXU matmul (T*B, E) x (E, 8H) ----
    xp = jnp.dot(x_ref[...], wi_ref[...], preferred_element_type=jnp.float32)
    # Per-direction slabs; lane ranges 0:G and G:2G are 128-lane tile aligned.
    xp_f = xp[:, 0:G]          # (T*B, 4H) forward-direction input gates
    xp_b = xp[:, G:2 * G]      # (T*B, 4H) backward-direction input gates

    wh_f = whf_ref[...]
    wh_b = whb_ref[...]
    b_f = bf_ref[...]
    b_b = bb_ref[...]

    def cell(gx, h, c, wh, b):
        # gx already holds x_t @ W_ih^T for this direction.
        gates = gx + jnp.dot(h, wh, preferred_element_type=jnp.float32) + b  # (B, 4H)
        sg = jax.nn.sigmoid(gates)        # one 128-lane EUP pass (i, f, o)
        tg = jnp.tanh(gates)              # one 128-lane EUP pass (g)
        i = sg[:, 0 * H:1 * H]
        f = sg[:, 1 * H:2 * H]
        g = tg[:, 2 * H:3 * H]
        o = sg[:, 3 * H:4 * H]
        c_new = f * c + i * g
        h_new = o * jnp.tanh(c_new)
        return h_new, c_new

    zero = jnp.zeros((B, H), jnp.float32)
    neg = jnp.full((B, H), -jnp.inf, jnp.float32)
    h_f, c_f, h_b, c_b = zero, zero, zero, zero
    sum_f, sum_b = zero, zero
    max_f, max_b = neg, neg

    # ---- unrolled time recurrence; pooling via running sum / running max ----
    # Forward direction consumes timestep s, backward consumes T-1-s; mean/max
    # over time are order-invariant, so no time alignment is needed.
    for s in range(T):
        gx_f = xp_f[s * B:(s + 1) * B, :]            # fwd gates of x[s]
        gx_b = xp_b[(T - 1 - s) * B:(T - s) * B, :]  # bwd gates of x[T-1-s]
        h_f, c_f = cell(gx_f, h_f, c_f, wh_f, b_f)
        h_b, c_b = cell(gx_b, h_b, c_b, wh_b, b_b)
        sum_f = sum_f + h_f
        sum_b = sum_b + h_b
        max_f = jnp.maximum(max_f, h_f)
        max_b = jnp.maximum(max_b, h_b)

    inv_t = 1.0 / T
    avg_f = sum_f * inv_t
    avg_b = sum_b * inv_t

    # conc = [avg_f | avg_b | max_f | max_b]; expressed as a row-block split of
    # W1 (avoids any in-kernel lane concatenation).
    z = (jnp.dot(avg_f, w1_ref[0 * H:1 * H, :], preferred_element_type=jnp.float32)
         + jnp.dot(avg_b, w1_ref[1 * H:2 * H, :], preferred_element_type=jnp.float32)
         + jnp.dot(max_f, w1_ref[2 * H:3 * H, :], preferred_element_type=jnp.float32)
         + jnp.dot(max_b, w1_ref[3 * H:4 * H, :], preferred_element_type=jnp.float32)
         + b1_ref[...])
    hdn = jnp.maximum(z, 0.0)                                # ReLU
    # dropout (eval mode) == identity
    out_ref[...] = (jnp.dot(hdn, w2_ref[...], preferred_element_type=jnp.float32)
                    + b2_ref[...])


# ----------------------------- wrapper ----------------------------------------
@functools.partial(jax.jit, static_argnames=())
def bilstm_forward(x_ids, params):
    # Embedding gather (frozen table) is glue -> plain JAX / XLA gather.
    # TODO(synk): an in-kernel gather would need manual per-token DMA from a
    # pl.ANY-resident table; at this size the XLA gather is cheaper.
    emb = jnp.take(params["embedding"], x_ids, axis=0)       # (B, T, E) float32
    x = jnp.transpose(emb, (1, 0, 2))                        # time-major (T, B, E)
    T, B, E = x.shape
    H = HIDDEN_SIZE
    C = params["b2"].shape[-1]

    x_flat = x.reshape(T * B, E)                             # (T*B, E)
    wi_cat = jnp.concatenate([params["wi_f"], params["wi_b"]], axis=1)   # (E, 8H)

    out = pl.pallas_call(
        bilstm_fused_kernel,
        out_shape=jax.ShapeDtypeStruct((B, C), jnp.float32),
        grid=(1,),
        in_specs=[
            pl.BlockSpec((T * B, E), lambda i: (0, 0)),      # x, flattened time-major
            pl.BlockSpec((E, 8 * H), lambda i: (0, 0)),      # [W_ih fwd | W_ih bwd]^T
            pl.BlockSpec((H, 4 * H), lambda i: (0, 0)),      # W_hh fwd^T
            pl.BlockSpec((H, 4 * H), lambda i: (0, 0)),      # W_hh bwd^T
            pl.BlockSpec((1, 4 * H), lambda i: (0, 0)),      # b fwd
            pl.BlockSpec((1, 4 * H), lambda i: (0, 0)),      # b bwd
            pl.BlockSpec((4 * H, H), lambda i: (0, 0)),      # W1 (in, out)
            pl.BlockSpec((1, H), lambda i: (0, 0)),          # b1
            pl.BlockSpec((H, C), lambda i: (0, 0)),          # W2 (in, out)
            pl.BlockSpec((1, C), lambda i: (0, 0)),          # b2
        ],
        out_specs=pl.BlockSpec((B, C), lambda i: (0, 0)),
        compiler_params=pltpu.CompilerParams(
            dimension_semantics=("arbitrary",)),
    )(x_flat, wi_cat,
      params["wh_f"], params["wh_b"], params["b_f"], params["b_b"],
      params["w1"], params["b1"], params["w2"], params["b2"])

    return out
    # TODO(synk): on v7x the two directions could be split across the two
    # TensorCores via pl.core_map(pltpu.create_tensorcore_mesh(...)); at this
    # toy size the single fused kernel is launch-overhead bound, so omitted.


# ----------------------------- pure-JAX reference (sanity check) --------------
def _lstm_ref(x, wi, wh, b, H):
    def step(carry, xt):
        h, c = carry
        gates = xt @ wi + h @ wh + b[0]
        i = jax.nn.sigmoid(gates[:, :H])
        f = jax.nn.sigmoid(gates[:, H:2 * H])
        g = jnp.tanh(gates[:, 2 * H:3 * H])
        o = jax.nn.sigmoid(gates[:, 3 * H:])
        c = f * c + i * g
        h = o * jnp.tanh(c)
        return (h, c), h
    B = x.shape[1]
    init = (jnp.zeros((B, H), jnp.float32), jnp.zeros((B, H), jnp.float32))
    _, hs = jax.lax.scan(step, init, x)
    return hs                                                # (T, B, H)


def bilstm_forward_ref(x_ids, params):
    H = HIDDEN_SIZE
    emb = jnp.take(params["embedding"], x_ids, axis=0)
    x = jnp.transpose(emb, (1, 0, 2))                        # (T, B, E)
    hf = _lstm_ref(x, params["wi_f"], params["wh_f"], params["b_f"], H)
    hb = _lstm_ref(x[::-1], params["wi_b"], params["wh_b"], params["b_b"], H)[::-1]
    h = jnp.concatenate([hf, hb], axis=-1)                   # (T, B, 2H)
    avg = jnp.mean(h, axis=0)
    mx = jnp.max(h, axis=0)
    conc = jnp.concatenate([avg, mx], axis=-1)               # (B, 4H)
    hid = jnp.maximum(conc @ params["w1"] + params["b1"][0], 0.0)
    return hid @ params["w2"] + params["b2"][0]


# ----------------------------- params & main ----------------------------------
def init_params(key):
    H, E, C = HIDDEN_SIZE, EMBED_SIZE, N_CLASSES
    ks = jax.random.split(key, 12)
    s = 1.0 / jnp.sqrt(H)
    u = lambda k, shape: jax.random.uniform(k, shape, jnp.float32, -s, s)
    return {
        # frozen embedding table (stand-in for `embedding_matrix`)
        "embedding": jax.random.normal(ks[0], (MAX_FEATURES, E), jnp.float32),
        # LSTM weights stored pre-transposed: (in, 4H) / (H, 4H), gate order i,f,g,o
        "wi_f": u(ks[1], (E, 4 * H)),
        "wh_f": u(ks[2], (H, 4 * H)),
        "b_f":  u(ks[3], (1, 4 * H)) + u(ks[4], (1, 4 * H)),   # b_ih + b_hh
        "wi_b": u(ks[5], (E, 4 * H)),
        "wh_b": u(ks[6], (H, 4 * H)),
        "b_b":  u(ks[7], (1, 4 * H)) + u(ks[8], (1, 4 * H)),
        # Linear(4H -> H) and Linear(H -> C), stored as (in, out)
        "w1": u(ks[9], (4 * H, H)),
        "b1": jnp.zeros((1, H), jnp.float32),
        "w2": u(ks[10], (H, C)),
        "b2": jnp.zeros((1, C), jnp.float32),
    }
    # TODO(synk): dropout is identity here (inference); training-mode dropout
    # would need pltpu.prng_seed/prng_random_bits inside the fused kernel.


if __name__ == "__main__":
    key = jax.random.PRNGKey(0)
    k_par, k_ids = jax.random.split(key)
    params = init_params(k_par)
    x_ids = jax.random.randint(k_ids, (BATCH, SEQ_LEN), 0, MAX_FEATURES, dtype=jnp.int32)

    out = bilstm_forward(x_ids, params)
    out = jax.block_until_ready(out)

    ref = jax.block_until_ready(bilstm_forward_ref(x_ids, params))
    assert out.shape == (BATCH, N_CLASSES)
    assert bool(jnp.all(jnp.isfinite(out)))
    assert bool(jnp.allclose(out, ref, atol=2e-2, rtol=2e-2))

    print("KERNEL_OK")
</pallas_src>

<mosaic_0001>
module attributes {stable_mosaic.version = 11 : i64} {
  func.func @bilstm_fused_kernel(%arg0: i32, %arg1: memref<16x300xf32, #tpu.memory_space<vmem>>, %arg2: memref<300x256xf32, #tpu.memory_space<vmem>>, %arg3: memref<32x128xf32, #tpu.memory_space<vmem>>, %arg4: memref<32x128xf32, #tpu.memory_space<vmem>>, %arg5: memref<1x128xf32, #tpu.memory_space<vmem>>, %arg6: memref<1x128xf32, #tpu.memory_space<vmem>>, %arg7: memref<128x32xf32, #tpu.memory_space<vmem>>, %arg8: memref<1x32xf32, #tpu.memory_space<vmem>>, %arg9: memref<32x4xf32, #tpu.memory_space<vmem>>, %arg10: memref<1x4xf32, #tpu.memory_space<vmem>>, %arg11: memref<2x4xf32, #tpu.memory_space<vmem>>) attributes {dimension_semantics = [#tpu.dimension_semantics<arbitrary>], iteration_bounds = array<i64: 1>, scalar_prefetch = 0 : i64, scratch_operands = 0 : i64, tpu.core_type = #tpu.core_type<tc>, window_params = [{pipeline_mode = #tpu.pipeline_mode<synchronous>, transform_indices = @transform_0, window_bounds = array<i64: 16, 300>}, {pipeline_mode = #tpu.pipeline_mode<synchronous>, transform_indices = @transform_1, window_bounds = array<i64: 300, 256>}, {pipeline_mode = #tpu.pipeline_mode<synchronous>, transform_indices = @transform_2, window_bounds = array<i64: 32, 128>}, {pipeline_mode = #tpu.pipeline_mode<synchronous>, transform_indices = @transform_3, window_bounds = array<i64: 32, 128>}, {pipeline_mode = #tpu.pipeline_mode<synchronous>, transform_indices = @transform_4, window_bounds = array<i64: 1, 128>}, {pipeline_mode = #tpu.pipeline_mode<synchronous>, transform_indices = @transform_5, window_bounds = array<i64: 1, 128>}, {pipeline_mode = #tpu.pipeline_mode<synchronous>, transform_indices = @transform_6, window_bounds = array<i64: 128, 32>}, {pipeline_mode = #tpu.pipeline_mode<synchronous>, transform_indices = @transform_7, window_bounds = array<i64: 1, 32>}, {pipeline_mode = #tpu.pipeline_mode<synchronous>, transform_indices = @transform_8, window_bounds = array<i64: 32, 4>}, {pipeline_mode = #tpu.pipeline_mode<synchronous>, transform_indices = @transform_9, window_bounds = array<i64: 1, 4>}, {pipeline_mode = #tpu.pipeline_mode<synchronous>, transform_indices = @transform_10, window_bounds = array<i64: 2, 4>}]} {
    %c0 = arith.constant 0 : index
    %c0_0 = arith.constant 0 : index
    %0 = vector.load %arg1[%c0, %c0_0] : memref<16x300xf32, #tpu.memory_space<vmem>>, vector<16x300xf32>
    %c0_1 = arith.constant 0 : index
    %c0_2 = arith.constant 0 : index
    %1 = vector.load %arg2[%c0_1, %c0_2] : memref<300x256xf32, #tpu.memory_space<vmem>>, vector<300x256xf32>
    %cst = arith.constant dense<0.000000e+00> : vector<16x256xf32>
    %2 = tpu.matmul %0, %1, %cst {dimension_numbers = #tpu.dot_dimension_numbers<[1], [0], [0], [1], [0, 0, 1, 1], [], []>} : vector<16x300xf32>, vector<300x256xf32>, vector<16x256xf32> -> vector<16x256xf32>
    %3 = vector.extract_strided_slice %2 {offsets = [0, 0], sizes = [16, 128], strides = [1, 1]} : vector<16x256xf32> to vector<16x128xf32>
    %4 = vector.extract_strided_slice %2 {offsets = [0, 128], sizes = [16, 128], strides = [1, 1]} : vector<16x256xf32> to vector<16x128xf32>
    %c0_3 = arith.constant 0 : index
    %c0_4 = arith.constant 0 : index
    %5 = vector.load %arg3[%c0_3, %c0_4] : memref<32x128xf32, #tpu.memory_space<vmem>>, vector<32x128xf32>
    %c0_5 = arith.constant 0 : index
    %c0_6 = arith.constant 0 : index
    %6 = vector.load %arg4[%c0_5, %c0_6] : memref<32x128xf32, #tpu.memory_space<vmem>>, vector<32x128xf32>
    %c0_7 = arith.constant 0 : index
    %c0_8 = arith.constant 0 : index
    %7 = vector.load %arg5[%c0_7, %c0_8] : memref<1x128xf32, #tpu.memory_space<vmem>>, vector<1x128xf32>
    %c0_9 = arith.constant 0 : index
    %c0_10 = arith.constant 0 : index
    %8 = vector.load %arg6[%c0_9, %c0_10] : memref<1x128xf32, #tpu.memory_space<vmem>>, vector<1x128xf32>
    %cst_11 = arith.constant 0.000000e+00 : f32
    %9 = vector.broadcast %cst_11 : f32 to vector<2x32xf32>
    %cst_12 = arith.constant 0xFF800000 : f32
    %10 = vector.broadcast %cst_12 : f32 to vector<2x32xf32>
    %11 = vector.extract_strided_slice %3 {offsets = [0, 0], sizes = [2, 128], strides = [1, 1]} : vector<16x128xf32> to vector<2x128xf32>
    %12 = vector.extract_strided_slice %4 {offsets = [14, 0], sizes = [2, 128], strides = [1, 1]} : vector<16x128xf32> to vector<2x128xf32>
    %cst_13 = arith.constant dense<0.000000e+00> : vector<2x128xf32>
    %13 = tpu.matmul %9, %5, %cst_13 {dimension_numbers = #tpu.dot_dimension_numbers<[1], [0], [0], [1], [0, 0, 1, 1], [], []>} : vector<2x32xf32>, vector<32x128xf32>, vector<2x128xf32> -> vector<2x128xf32>
    %14 = arith.addf %11, %13 : vector<2x128xf32>
    %15 = vector.broadcast %7 : vector<1x128xf32> to vector<2x128xf32>
    %16 = arith.addf %14, %15 : vector<2x128xf32>
    %17 = arith.negf %16 : vector<2x128xf32>
    %18 = math.exp %17 : vector<2x128xf32>
    %cst_14 = arith.constant 1.000000e+00 : f32
    %19 = vector.broadcast %cst_14 : f32 to vector<2x128xf32>
    %20 = arith.addf %19, %18 : vector<2x128xf32>
    %21 = arith.divf %19, %20 : vector<2x128xf32>
    %22 = math.tanh %16 : vector<2x128xf32>
    %23 = vector.extract_strided_slice %21 {offsets = [0, 0], sizes = [2, 32], strides = [1, 1]} : vector<2x128xf32> to vector<2x32xf32>
    %24 = vector.extract_strided_slice %21 {offsets = [0, 32], sizes = [2, 32], strides = [1, 1]} : vector<2x128xf32> to vector<2x32xf32>
    %25 = vector.extract_strided_slice %22 {offsets = [0, 64], sizes = [2, 32], strides = [1, 1]} : vector<2x128xf32> to vector<2x32xf32>
    %26 = vector.extract_strided_slice %21 {offsets = [0, 96], sizes = [2, 32], strides = [1, 1]} : vector<2x128xf32> to vector<2x32xf32>
    %27 = arith.mulf %24, %9 : vector<2x32xf32>
    %28 = arith.mulf %23, %25 : vector<2x32xf32>
    %29 = arith.addf %27, %28 : vector<2x32xf32>
    %30 = math.tanh %29 : vector<2x32xf32>
    %31 = arith.mulf %26, %30 : vector<2x32xf32>
    %cst_15 = arith.constant dense<0.000000e+00> : vector<2x128xf32>
    %32 = tpu.matmul %9, %6, %cst_15 {dimension_numbers = #tpu.dot_dimension_numbers<[1], [0], [0], [1], [0, 0, 1, 1], [], []>} : vector<2x32xf32>, vector<32x128xf32>, vector<2x128xf32> -> vector<2x128xf32>
    %33 = arith.addf %12, %32 : vector<2x128xf32>
    %34 = vector.broadcast %8 : vector<1x128xf32> to vector<2x128xf32>
    %35 = arith.addf %33, %34 : vector<2x128xf32>
    %36 = arith.negf %35 : vector<2x128xf32>
    %37 = math.exp %36 : vector<2x128xf32>
    %cst_16 = arith.constant 1.000000e+00 : f32
    %38 = vector.broadcast %cst_16 : f32 to vector<2x128xf32>
    %39 = arith.addf %38, %37 : vector<2x128xf32>
    %40 = arith.divf %38, %39 : vector<2x128xf32>
    %41 = math.tanh %35 : vector<2x128xf32>
    %42 = vector.extract_strided_slice %40 {offsets = [0, 0], sizes = [2, 32], strides = [1, 1]} : vector<2x128xf32> to vector<2x32xf32>
    %43 = vector.extract_strided_slice %40 {offsets = [0, 32], sizes = [2, 32], strides = [1, 1]} : vector<2x128xf32> to vector<2x32xf32>
    %44 = vector.extract_strided_slice %41 {offsets = [0, 64], sizes = [2, 32], strides = [1, 1]} : vector<2x128xf32> to vector<2x32xf32>
    %45 = vector.extract_strided_slice %40 {offsets = [0, 96], sizes = [2, 32], strides = [1, 1]} : vector<2x128xf32> to vector<2x32xf32>
    %46 = arith.mulf %43, %9 : vector<2x32xf32>
    %47 = arith.mulf %42, %44 : vector<2x32xf32>
    %48 = arith.addf %46, %47 : vector<2x32xf32>
    %49 = math.tanh %48 : vector<2x32xf32>
    %50 = arith.mulf %45, %49 : vector<2x32xf32>
    %51 = arith.addf %9, %31 : vector<2x32xf32>
    %52 = arith.addf %9, %50 : vector<2x32xf32>
    %53 = arith.maximumf %10, %31 : vector<2x32xf32>
    %54 = arith.maximumf %10, %50 : vector<2x32xf32>
    %55 = vector.extract_strided_slice %3 {offsets = [2, 0], sizes = [2, 128], strides = [1, 1]} : vector<16x128xf32> to vector<2x128xf32>
    %56 = vector.extract_strided_slice %4 {offsets = [12, 0], sizes = [2, 128], strides = [1, 1]} : vector<16x128xf32> to vector<2x128xf32>
    %cst_17 = arith.constant dense<0.000000e+00> : vector<2x128xf32>
    %57 = tpu.matmul %31, %5, %cst_17 {dimension_numbers = #tpu.dot_dimension_numbers<[1], [0], [0], [1], [0, 0, 1, 1], [], []>} : vector<2x32xf32>, vector<32x128xf32>, vector<2x128xf32> -> vector<2x128xf32>
    %58 = arith.addf %55, %57 : vector<2x128xf32>
    %59 = vector.broadcast %7 : vector<1x128xf32> to vector<2x128xf32>
    %60 = arith.addf %58, %59 : vector<2x128xf32>
    %61 = arith.negf %60 : vector<2x128xf32>
    %62 = math.exp %61 : vector<2x128xf32>
    %cst_18 = arith.constant 1.000000e+00 : f32
    %63 = vector.broadcast %cst_18 : f32 to vector<2x128xf32>
    %64 = arith.addf %63, %62 : vector<2x128xf32>
    %65 = arith.divf %63, %64 : vector<2x128xf32>
    %66 = math.tanh %60 : vector<2x128xf32>
    %67 = vector.extract_strided_slice %65 {offsets = [0, 0], sizes = [2, 32], strides = [1, 1]} : vector<2x128xf32> to vector<2x32xf32>
    %68 = vector.extract_strided_slice %65 {offsets = [0, 32], sizes = [2, 32], strides = [1, 1]} : vector<2x128xf32> to vector<2x32xf32>
    %69 = vector.extract_strided_slice %66 {offsets = [0, 64], sizes = [2, 32], strides = [1, 1]} : vector<2x128xf32> to vector<2x32xf32>
    %70 = vector.extract_strided_slice %65 {offsets = [0, 96], sizes = [2, 32], strides = [1, 1]} : vector<2x128xf32> to vector<2x32xf32>
    %71 = arith.mulf %68, %29 : vector<2x32xf32>
    %72 = arith.mulf %67, %69 : vector<2x32xf32>
    %73 = arith.addf %71, %72 : vector<2x32xf32>
    %74 = math.tanh %73 : vector<2x32xf32>
    %75 = arith.mulf %70, %74 : vector<2x32xf32>
    %cst_19 = arith.constant dense<0.000000e+00> : vector<2x128xf32>
    %76 = tpu.matmul %50, %6, %cst_19 {dimension_numbers = #tpu.dot_dimension_numbers<[1], [0], [0], [1], [0, 0, 1, 1], [], []>} : vector<2x32xf32>, vector<32x128xf32>, vector<2x128xf32> -> vector<2x128xf32>
    %77 = arith.addf %56, %76 : vector<2x128xf32>
    %78 = vector.broadcast %8 : vector<1x128xf32> to vector<2x128xf32>
    %79 = arith.addf %77, %78 : vector<2x128xf32>
    %80 = arith.negf %79 : vector<2x128xf32>
    %81 = math.exp %80 : vector<2x128xf32>
    %cst_20 = arith.constant 1.000000e+00 : f32
    %82 = vector.broadcast %cst_20 : f32 to vector<2x128xf32>
    %83 = arith.addf %82, %81 : vector<2x128xf32>
    %84 = arith.divf %82, %83 : vector<2x128xf32>
    %85 = math.tanh %79 : vector<2x128xf32>
    %86 = vector.extract_strided_slice %84 {offsets = [0, 0], sizes = [2, 32], strides = [1, 1]} : vector<2x128xf32> to vector<2x32xf32>
    %87 = vector.extract_strided_slice %84 {offsets = [0, 32], sizes = [2, 32], strides = [1, 1]} : vector<2x128xf32> to vector<2x32xf32>
    %88 = vector.extract_strided_slice %85 {offsets = [0, 64], sizes = [2, 32], strides = [1, 1]} : vector<2x128xf32> to vector<2x32xf32>
    %89 = vector.extract_strided_slice %84 {offsets = [0, 96], sizes = [2, 32], strides = [1, 1]} : vector<2x128xf32> to vector<2x32xf32>
    %90 = arith.mulf %87, %48 : vector<2x32xf32>
    %91 = arith.mulf %86, %88 : vector<2x32xf32>
    %92 = arith.addf %90, %91 : vector<2x32xf32>
    %93 = math.tanh %92 : vector<2x32xf32>
    %94 = arith.mulf %89, %93 : vector<2x32xf32>
    %95 = arith.addf %51, %75 : vector<2x32xf32>
    %96 = arith.addf %52, %94 : vector<2x32xf32>
    %97 = arith.maximumf %53, %75 : vector<2x32xf32>
    %98 = arith.maximumf %54, %94 : vector<2x32xf32>
    %99 = vector.extract_strided_slice %3 {offsets = [4, 0], sizes = [2, 128], strides = [1, 1]} : vector<16x128xf32> to vector<2x128xf32>
    %100 = vector.extract_strided_slice %4 {offsets = [10, 0], sizes = [2, 128], strides = [1, 1]} : vector<16x128xf32> to vector<2x128xf32>
    %cst_21 = arith.constant dense<0.000000e+00> : vector<2x128xf32>
    %101 = tpu.matmul %75, %5, %cst_21 {dimension_numbers = #tpu.dot_dimension_numbers<[1], [0], [0], [1], [0, 0, 1, 1], [], []>} : vector<2x32xf32>, vector<32x128xf32>, vector<2x128xf32> -> vector<2x128xf32>
    %102 = arith.addf %99, %101 : vector<2x128xf32>
    %103 = vector.broadcast %7 : vector<1x128xf32> to vector<2x128xf32>
    %104 = arith.addf %102, %103 : vector<2x128xf32>
    %105 = arith.negf %104 : vector<2x128xf32>
    %106 = math.exp %105 : vector<2x128xf32>
    %cst_22 = arith.constant 1.000000e+00 : f32
    %107 = vector.broadcast %cst_22 : f32 to vector<2x128xf32>
    %108 = arith.addf %107, %106 : vector<2x128xf32>
    %109 = arith.divf %107, %108 : vector<2x128xf32>
    %110 = math.tanh %104 : vector<2x128xf32>
    %111 = vector.extract_strided_slice %109 {offsets = [0, 0], sizes = [2, 32], strides = [1, 1]} : vector<2x128xf32> to vector<2x32xf32>
    %112 = vector.extract_strided_slice %109 {offsets = [0, 32], sizes = [2, 32], strides = [1, 1]} : vector<2x128xf32> to vector<2x32xf32>
    %113 = vector.extract_strided_slice %110 {offsets = [0, 64], sizes = [2, 32], strides = [1, 1]} : vector<2x128xf32> to vector<2x32xf32>
    %114 = vector.extract_strided_slice %109 {offsets = [0, 96], sizes = [2, 32], strides = [1, 1]} : vector<2x128xf32> to vector<2x32xf32>
    %115 = arith.mulf %112, %73 : vector<2x32xf32>
    %116 = arith.mulf %111, %113 : vector<2x32xf32>
    %117 = arith.addf %115, %116 : vector<2x32xf32>
    %118 = math.tanh %117 : vector<2x32xf32>
    %119 = arith.mulf %114, %118 : vector<2x32xf32>
    %cst_23 = arith.constant dense<0.000000e+00> : vector<2x128xf32>
    %120 = tpu.matmul %94, %6, %cst_23 {dimension_numbers = #tpu.dot_dimension_numbers<[1], [0], [0], [1], [0, 0, 1, 1], [], []>} : vector<2x32xf32>, vector<32x128xf32>, vector<2x128xf32> -> vector<2x128xf32>
    %121 = arith.addf %100, %120 : vector<2x128xf32>
    %122 = vector.broadcast %8 : vector<1x128xf32> to vector<2x128xf32>
    %123 = arith.addf %121, %122 : vector<2x128xf32>
    %124 = arith.negf %123 : vector<2x128xf32>
    %125 = math.exp %124 : vector<2x128xf32>
    %cst_24 = arith.constant 1.000000e+00 : f32
    %126 = vector.broadcast %cst_24 : f32 to vector<2x128xf32>
    %127 = arith.addf %126, %125 : vector<2x128xf32>
    %128 = arith.divf %126, %127 : vector<2x128xf32>
    %129 = math.tanh %123 : vector<2x128xf32>
    %130 = vector.extract_strided_slice %128 {offsets = [0, 0], sizes = [2, 32], strides = [1, 1]} : vector<2x128xf32> to vector<2x32xf32>
    %131 = vector.extract_strided_slice %128 {offsets = [0, 32], sizes = [2, 32], strides = [1, 1]} : vector<2x128xf32> to vector<2x32xf32>
    %132 = vector.extract_strided_slice %129 {offsets = [0, 64], sizes = [2, 32], strides = [1, 1]} : vector<2x128xf32> to vector<2x32xf32>
    %133 = vector.extract_strided_slice %128 {offsets = [0, 96], sizes = [2, 32], strides = [1, 1]} : vector<2x128xf32> to vector<2x32xf32>
    %134 = arith.mulf %131, %92 : vector<2x32xf32>
    %135 = arith.mulf %130, %132 : vector<2x32xf32>
    %136 = arith.addf %134, %135 : vector<2x32xf32>
    %137 = math.tanh %136 : vector<2x32xf32>
    %138 = arith.mulf %133, %137 : vector<2x32xf32>
    %139 = arith.addf %95, %119 : vector<2x32xf32>
    %140 = arith.addf %96, %138 : vector<2x32xf32>
    %141 = arith.maximumf %97, %119 : vector<2x32xf32>
    %142 = arith.maximumf %98, %138 : vector<2x32xf32>
    %143 = vector.extract_strided_slice %3 {offsets = [6, 0], sizes = [2, 128], strides = [1, 1]} : vector<16x128xf32> to vector<2x128xf32>
    %144 = vector.extract_strided_slice %4 {offsets = [8, 0], sizes = [2, 128], strides = [1, 1]} : vector<16x128xf32> to vector<2x128xf32>
    %cst_25 = arith.constant dense<0.000000e+00> : vector<2x128xf32>
    %145 = tpu.matmul %119, %5, %cst_25 {dimension_numbers = #tpu.dot_dimension_numbers<[1], [0], [0], [1], [0, 0, 1, 1], [], []>} : vector<2x32xf32>, vector<32x128xf32>, vector<2x128xf32> -> vector<2x128xf32>
    %146 = arith.addf %143, %145 : vector<2x128xf32>
    %147 = vector.broadcast %7 : vector<1x128xf32> to vector<2x128xf32>
    %148 = arith.addf %146, %147 : vector<2x128xf32>
    %149 = arith.negf %148 : vector<2x128xf32>
    %150 = math.exp %149 : vector<2x128xf32>
    %cst_26 = arith.constant 1.000000e+00 : f32
    %151 = vector.broadcast %cst_26 : f32 to vector<2x128xf32>
    %152 = arith.addf %151, %150 : vector<2x128xf32>
    %153 = arith.divf %151, %152 : vector<2x128xf32>
    %154 = math.tanh %148 : vector<2x128xf32>
    %155 = vector.extract_strided_slice %153 {offsets = [0, 0], sizes = [2, 32], strides = [1, 1]} : vector<2x128xf32> to vector<2x32xf32>
    %156 = vector.extract_strided_slice %153 {offsets = [0, 32], sizes = [2, 32], strides = [1, 1]} : vector<2x128xf32> to vector<2x32xf32>
    %157 = vector.extract_strided_slice %154 {offsets = [0, 64], sizes = [2, 32], strides = [1, 1]} : vector<2x128xf32> to vector<2x32xf32>
    %158 = vector.extract_strided_slice %153 {offsets = [0, 96], sizes = [2, 32], strides = [1, 1]} : vector<2x128xf32> to vector<2x32xf32>
    %159 = arith.mulf %156, %117 : vector<2x32xf32>
    %160 = arith.mulf %155, %157 : vector<2x32xf32>
    %161 = arith.addf %159, %160 : vector<2x32xf32>
    %162 = math.tanh %161 : vector<2x32xf32>
    %163 = arith.mulf %158, %162 : vector<2x32xf32>
    %cst_27 = arith.constant dense<0.000000e+00> : vector<2x128xf32>
    %164 = tpu.matmul %138, %6, %cst_27 {dimension_numbers = #tpu.dot_dimension_numbers<[1], [0], [0], [1], [0, 0, 1, 1], [], []>} : vector<2x32xf32>, vector<32x128xf32>, vector<2x128xf32> -> vector<2x128xf32>
    %165 = arith.addf %144, %164 : vector<2x128xf32>
    %166 = vector.broadcast %8 : vector<1x128xf32> to vector<2x128xf32>
    %167 = arith.addf %165, %166 : vector<2x128xf32>
    %168 = arith.negf %167 : vector<2x128xf32>
    %169 = math.exp %168 : vector<2x128xf32>
    %cst_28 = arith.constant 1.000000e+00 : f32
    %170 = vector.broadcast %cst_28 : f32 to vector<2x128xf32>
    %171 = arith.addf %170, %169 : vector<2x128xf32>
    %172 = arith.divf %170, %171 : vector<2x128xf32>
    %173 = math.tanh %167 : vector<2x128xf32>
    %174 = vector.extract_strided_slice %172 {offsets = [0, 0], sizes = [2, 32], strides = [1, 1]} : vector<2x128xf32> to vector<2x32xf32>
    %175 = vector.extract_strided_slice %172 {offsets = [0, 32], sizes = [2, 32], strides = [1, 1]} : vector<2x128xf32> to vector<2x32xf32>
    %176 = vector.extract_strided_slice %173 {offsets = [0, 64], sizes = [2, 32], strides = [1, 1]} : vector<2x128xf32> to vector<2x32xf32>
    %177 = vector.extract_strided_slice %172 {offsets = [0, 96], sizes = [2, 32], strides = [1, 1]} : vector<2x128xf32> to vector<2x32xf32>
    %178 = arith.mulf %175, %136 : vector<2x32xf32>
    %179 = arith.mulf %174, %176 : vector<2x32xf32>
    %180 = arith.addf %178, %179 : vector<2x32xf32>
    %181 = math.tanh %180 : vector<2x32xf32>
    %182 = arith.mulf %177, %181 : vector<2x32xf32>
    %183 = arith.addf %139, %163 : vector<2x32xf32>
    %184 = arith.addf %140, %182 : vector<2x32xf32>
    %185 = arith.maximumf %141, %163 : vector<2x32xf32>
    %186 = arith.maximumf %142, %182 : vector<2x32xf32>
    %187 = vector.extract_strided_slice %3 {offsets = [8, 0], sizes = [2, 128], strides = [1, 1]} : vector<16x128xf32> to vector<2x128xf32>
    %188 = vector.extract_strided_slice %4 {offsets = [6, 0], sizes = [2, 128], strides = [1, 1]} : vector<16x128xf32> to vector<2x128xf32>
    %cst_29 = arith.constant dense<0.000000e+00> : vector<2x128xf32>
    %189 = tpu.matmul %163, %5, %cst_29 {dimension_numbers = #tpu.dot_dimension_numbers<[1], [0], [0], [1], [0, 0, 1, 1], [], []>} : vector<2x32xf32>, vector<32x128xf32>, vector<2x128xf32> -> vector<2x128xf32>
    %190 = arith.addf %187, %189 : vector<2x128xf32>
    %191 = vector.broadcast %7 : vector<1x128xf32> to vector<2x128xf32>
    %192 = arith.addf %190, %191 : vector<2x128xf32>
    %193 = arith.negf %192 : vector<2x128xf32>
    %194 = math.exp %193 : vector<2x128xf32>
    %cst_30 = arith.constant 1.000000e+00 : f32
    %195 = vector.broadcast %cst_30 : f32 to vector<2x128xf32>
    %196 = arith.addf %195, %194 : vector<2x128xf32>
    %197 = arith.divf %195, %196 : vector<2x128xf32>
    %198 = math.tanh %192 : vector<2x128xf32>
    %199 = vector.extract_strided_slice %197 {offsets = [0, 0], sizes = [2, 32], strides = [1, 1]} : vector<2x128xf32> to vector<2x32xf32>
    %200 = vector.extract_strided_slice %197 {offsets = [0, 32], sizes = [2, 32], strides = [1, 1]} : vector<2x128xf32> to vector<2x32xf32>
    %201 = vector.extract_strided_slice %198 {offsets = [0, 64], sizes = [2, 32], strides = [1, 1]} : vector<2x128xf32> to vector<2x32xf32>
    %202 = vector.extract_strided_slice %197 {offsets = [0, 96], sizes = [2, 32], strides = [1, 1]} : vector<2x128xf32> to vector<2x32xf32>
    %203 = arith.mulf %200, %161 : vector<2x32xf32>
    %204 = arith.mulf %199, %201 : vector<2x32xf32>
    %205 = arith.addf %203, %204 : vector<2x32xf32>
    %206 = math.tanh %205 : vector<2x32xf32>
    %207 = arith.mulf %202, %206 : vector<2x32xf32>
    %cst_31 = arith.constant dense<0.000000e+00> : vector<2x128xf32>
    %208 = tpu.matmul %182, %6, %cst_31 {dimension_numbers = #tpu.dot_dimension_numbers<[1], [0], [0], [1], [0, 0, 1, 1], [], []>} : vector<2x32xf32>, vector<32x128xf32>, vector<2x128xf32> -> vector<2x128xf32>
    %209 = arith.addf %188, %208 : vector<2x128xf32>
    %210 = vector.broadcast %8 : vector<1x128xf32> to vector<2x128xf32>
    %211 = arith.addf %209, %210 : vector<2x128xf32>
    %212 = arith.negf %211 : vector<2x128xf32>
    %213 = math.exp %212 : vector<2x128xf32>
    %cst_32 = arith.constant 1.000000e+00 : f32
    %214 = vector.broadcast %cst_32 : f32 to vector<2x128xf32>
    %215 = arith.addf %214, %213 : vector<2x128xf32>
    %216 = arith.divf %214, %215 : vector<2x128xf32>
    %217 = math.tanh %211 : vector<2x128xf32>
    %218 = vector.extract_strided_slice %216 {offsets = [0, 0], sizes = [2, 32], strides = [1, 1]} : vector<2x128xf32> to vector<2x32xf32>
    %219 = vector.extract_strided_slice %216 {offsets = [0, 32], sizes = [2, 32], strides = [1, 1]} : vector<2x128xf32> to vector<2x32xf32>
    %220 = vector.extract_strided_slice %217 {offsets = [0, 64], sizes = [2, 32], strides = [1, 1]} : vector<2x128xf32> to vector<2x32xf32>
    %221 = vector.extract_strided_slice %216 {offsets = [0, 96], sizes = [2, 32], strides = [1, 1]} : vector<2x128xf32> to vector<2x32xf32>
    %222 = arith.mulf %219, %180 : vector<2x32xf32>
    %223 = arith.mulf %218, %220 : vector<2x32xf32>
    %224 = arith.addf %222, %223 : vector<2x32xf32>
    %225 = math.tanh %224 : vector<2x32xf32>
    %226 = arith.mulf %221, %225 : vector<2x32xf32>
    %227 = arith.addf %183, %207 : vector<2x32xf32>
    %228 = arith.addf %184, %226 : vector<2x32xf32>
    %229 = arith.maximumf %185, %207 : vector<2x32xf32>
    %230 = arith.maximumf %186, %226 : vector<2x32xf32>
    %231 = vector.extract_strided_slice %3 {offsets = [10, 0], sizes = [2, 128], strides = [1, 1]} : vector<16x128xf32> to vector<2x128xf32>
    %232 = vector.extract_strided_slice %4 {offsets = [4, 0], sizes = [2, 128], strides = [1, 1]} : vector<16x128xf32> to vector<2x128xf32>
    %cst_33 = arith.constant dense<0.000000e+00> : vector<2x128xf32>
    %233 = tpu.matmul %207, %5, %cst_33 {dimension_numbers = #tpu.dot_dimension_numbers<[1], [0], [0], [1], [0, 0, 1, 1], [], []>} : vector<2x32xf32>, vector<32x128xf32>, vector<2x128xf32> -> vector<2x128xf32>
    %234 = arith.addf %231, %233 : vector<2x128xf32>
    %235 = vector.broadcast %7 : vector<1x128xf32> to vector<2x128xf32>
    %236 = arith.addf %234, %235 : vector<2x128xf32>
    %237 = arith.negf %236 : vector<2x128xf32>
    %238 = math.exp %237 : vector<2x128xf32>
    %cst_34 = arith.constant 1.000000e+00 : f32
    %239 = vector.broadcast %cst_34 : f32 to vector<2x128xf32>
    %240 = arith.addf %239, %238 : vector<2x128xf32>
    %241 = arith.divf %239, %240 : vector<2x128xf32>
    %242 = math.tanh %236 : vector<2x128xf32>
    %243 = vector.extract_strided_slice %241 {offsets = [0, 0], sizes = [2, 32], strides = [1, 1]} : vector<2x128xf32> to vector<2x32xf32>
    %244 = vector.extract_strided_slice %241 {offsets = [0, 32], sizes = [2, 32], strides = [1, 1]} : vector<2x128xf32> to vector<2x32xf32>
    %245 = vector.extract_strided_slice %242 {offsets = [0, 64], sizes = [2, 32], strides = [1, 1]} : vector<2x128xf32> to vector<2x32xf32>
    %246 = vector.extract_strided_slice %241 {offsets = [0, 96], sizes = [2, 32], strides = [1, 1]} : vector<2x128xf32> to vector<2x32xf32>
    %247 = arith.mulf %244, %205 : vector<2x32xf32>
    %248 = arith.mulf %243, %245 : vector<2x32xf32>
    %249 = arith.addf %247, %248 : vector<2x32xf32>
    %250 = math.tanh %249 : vector<2x32xf32>
    %251 = arith.mulf %246, %250 : vector<2x32xf32>
    %cst_35 = arith.constant dense<0.000000e+00> : vector<2x128xf32>
    %252 = tpu.matmul %226, %6, %cst_35 {dimension_numbers = #tpu.dot_dimension_numbers<[1], [0], [0], [1], [0, 0, 1, 1], [], []>} : vector<2x32xf32>, vector<32x128xf32>, vector<2x128xf32> -> vector<2x128xf32>
    %253 = arith.addf %232, %252 : vector<2x128xf32>
    %254 = vector.broadcast %8 : vector<1x128xf32> to vector<2x128xf32>
    %255 = arith.addf %253, %254 : vector<2x128xf32>
    %256 = arith.negf %255 : vector<2x128xf32>
    %257 = math.exp %256 : vector<2x128xf32>
    %cst_36 = arith.constant 1.000000e+00 : f32
    %258 = vector.broadcast %cst_36 : f32 to vector<2x128xf32>
    %259 = arith.addf %258, %257 : vector<2x128xf32>
    %260 = arith.divf %258, %259 : vector<2x128xf32>
    %261 = math.tanh %255 : vector<2x128xf32>
    %262 = vector.extract_strided_slice %260 {offsets = [0, 0], sizes = [2, 32], strides = [1, 1]} : vector<2x128xf32> to vector<2x32xf32>
    %263 = vector.extract_strided_slice %260 {offsets = [0, 32], sizes = [2, 32], strides = [1, 1]} : vector<2x128xf32> to vector<2x32xf32>
    %264 = vector.extract_strided_slice %261 {offsets = [0, 64], sizes = [2, 32], strides = [1, 1]} : vector<2x128xf32> to vector<2x32xf32>
    %265 = vector.extract_strided_slice %260 {offsets = [0, 96], sizes = [2, 32], strides = [1, 1]} : vector<2x128xf32> to vector<2x32xf32>
    %266 = arith.mulf %263, %224 : vector<2x32xf32>
    %267 = arith.mulf %262, %264 : vector<2x32xf32>
    %268 = arith.addf %266, %267 : vector<2x32xf32>
    %269 = math.tanh %268 : vector<2x32xf32>
    %270 = arith.mulf %265, %269 : vector<2x32xf32>
    %271 = arith.addf %227, %251 : vector<2x32xf32>
    %272 = arith.addf %228, %270 : vector<2x32xf32>
    %273 = arith.maximumf %229, %251 : vector<2x32xf32>
    %274 = arith.maximumf %230, %270 : vector<2x32xf32>
    %275 = vector.extract_strided_slice %3 {offsets = [12, 0], sizes = [2, 128], strides = [1, 1]} : vector<16x128xf32> to vector<2x128xf32>
    %276 = vector.extract_strided_slice %4 {offsets = [2, 0], sizes = [2, 128], strides = [1, 1]} : vector<16x128xf32> to vector<2x128xf32>
    %cst_37 = arith.constant dense<0.000000e+00> : vector<2x128xf32>
    %277 = tpu.matmul %251, %5, %cst_37 {dimension_numbers = #tpu.dot_dimension_numbers<[1], [0], [0], [1], [0, 0, 1, 1], [], []>} : vector<2x32xf32>, vector<32x128xf32>, vector<2x128xf32> -> vector<2x128xf32>
    %278 = arith.addf %275, %277 : vector<2x128xf32>
    %279 = vector.broadcast %7 : vector<1x128xf32> to vector<2x128xf32>
    %280 = arith.addf %278, %279 : vector<2x128xf32>
    %281 = arith.negf %280 : vector<2x128xf32>
    %282 = math.exp %281 : vector<2x128xf32>
    %cst_38 = arith.constant 1.000000e+00 : f32
    %283 = vector.broadcast %cst_38 : f32 to vector<2x128xf32>
    %284 = arith.addf %283, %282 : vector<2x128xf32>
    %285 = arith.divf %283, %284 : vector<2x128xf32>
    %286 = math.tanh %280 : vector<2x128xf32>
    %287 = vector.extract_strided_slice %285 {offsets = [0, 0], sizes = [2, 32], strides = [1, 1]} : vector<2x128xf32> to vector<2x32xf32>
    %288 = vector.extract_strided_slice %285 {offsets = [0, 32], sizes = [2, 32], strides = [1, 1]} : vector<2x128xf32> to vector<2x32xf32>
    %289 = vector.extract_strided_slice %286 {offsets = [0, 64], sizes = [2, 32], strides = [1, 1]} : vector<2x128xf32> to vector<2x32xf32>
    %290 = vector.extract_strided_slice %285 {offsets = [0, 96], sizes = [2, 32], strides = [1, 1]} : vector<2x128xf32> to vector<2x32xf32>
    %291 = arith.mulf %288, %249 : vector<2x32xf32>
    %292 = arith.mulf %287, %289 : vector<2x32xf32>
    %293 = arith.addf %291, %292 : vector<2x32xf32>
    %294 = math.tanh %293 : vector<2x32xf32>
    %295 = arith.mulf %290, %294 : vector<2x32xf32>
    %cst_39 = arith.constant dense<0.000000e+00> : vector<2x128xf32>
    %296 = tpu.matmul %270, %6, %cst_39 {dimension_numbers = #tpu.dot_dimension_numbers<[1], [0], [0], [1], [0, 0, 1, 1], [], []>} : vector<2x32xf32>, vector<32x128xf32>, vector<2x128xf32> -> vector<2x128xf32>
    %297 = arith.addf %276, %296 : vector<2x128xf32>
    %298 = vector.broadcast %8 : vector<1x128xf32> to vector<2x128xf32>
    %299 = arith.addf %297, %298 : vector<2x128xf32>
    %300 = arith.negf %299 : vector<2x128xf32>
    %301 = math.exp %300 : vector<2x128xf32>
    %cst_40 = arith.constant 1.000000e+00 : f32
    %302 = vector.broadcast %cst_40 : f32 to vector<2x128xf32>
    %303 = arith.addf %302, %301 : vector<2x128xf32>
    %304 = arith.divf %302, %303 : vector<2x128xf32>
    %305 = math.tanh %299 : vector<2x128xf32>
    %306 = vector.extract_strided_slice %304 {offsets = [0, 0], sizes = [2, 32], strides = [1, 1]} : vector<2x128xf32> to vector<2x32xf32>
    %307 = vector.extract_strided_slice %304 {offsets = [0, 32], sizes = [2, 32], strides = [1, 1]} : vector<2x128xf32> to vector<2x32xf32>
    %308 = vector.extract_strided_slice %305 {offsets = [0, 64], sizes = [2, 32], strides = [1, 1]} : vector<2x128xf32> to vector<2x32xf32>
    %309 = vector.extract_strided_slice %304 {offsets = [0, 96], sizes = [2, 32], strides = [1, 1]} : vector<2x128xf32> to vector<2x32xf32>
    %310 = arith.mulf %307, %268 : vector<2x32xf32>
    %311 = arith.mulf %306, %308 : vector<2x32xf32>
    %312 = arith.addf %310, %311 : vector<2x32xf32>
    %313 = math.tanh %312 : vector<2x32xf32>
    %314 = arith.mulf %309, %313 : vector<2x32xf32>
    %315 = arith.addf %271, %295 : vector<2x32xf32>
    %316 = arith.addf %272, %314 : vector<2x32xf32>
    %317 = arith.maximumf %273, %295 : vector<2x32xf32>
    %318 = arith.maximumf %274, %314 : vector<2x32xf32>
    %319 = vector.extract_strided_slice %3 {offsets = [14, 0], sizes = [2, 128], strides = [1, 1]} : vector<16x128xf32> to vector<2x128xf32>
    %320 = vector.extract_strided_slice %4 {offsets = [0, 0], sizes = [2, 128], strides = [1, 1]} : vector<16x128xf32> to vector<2x128xf32>
    %cst_41 = arith.constant dense<0.000000e+00> : vector<2x128xf32>
    %321 = tpu.matmul %295, %5, %cst_41 {dimension_numbers = #tpu.dot_dimension_numbers<[1], [0], [0], [1], [0, 0, 1, 1], [], []>} : vector<2x32xf32>, vector<32x128xf32>, vector<2x128xf32> -> vector<2x128xf32>
    %322 = arith.addf %319, %321 : vector<2x128xf32>
    %323 = vector.broadcast %7 : vector<1x128xf32> to vector<2x128xf32>
    %324 = arith.addf %322, %323 : vector<2x128xf32>
    %325 = arith.negf %324 : vector<2x128xf32>
    %326 = math.exp %325 : vector<2x128xf32>
    %cst_42 = arith.constant 1.000000e+00 : f32
    %327 = vector.broadcast %cst_42 : f32 to vector<2x128xf32>
    %328 = arith.addf %327, %326 : vector<2x128xf32>
    %329 = arith.divf %327, %328 : vector<2x128xf32>
    %330 = math.tanh %324 : vector<2x128xf32>
    %331 = vector.extract_strided_slice %329 {offsets = [0, 0], sizes = [2, 32], strides = [1, 1]} : vector<2x128xf32> to vector<2x32xf32>
    %332 = vector.extract_strided_slice %329 {offsets = [0, 32], sizes = [2, 32], strides = [1, 1]} : vector<2x128xf32> to vector<2x32xf32>
    %333 = vector.extract_strided_slice %330 {offsets = [0, 64], sizes = [2, 32], strides = [1, 1]} : vector<2x128xf32> to vector<2x32xf32>
    %334 = vector.extract_strided_slice %329 {offsets = [0, 96], sizes = [2, 32], strides = [1, 1]} : vector<2x128xf32> to vector<2x32xf32>
    %335 = arith.mulf %332, %293 : vector<2x32xf32>
    %336 = arith.mulf %331, %333 : vector<2x32xf32>
    %337 = arith.addf %335, %336 : vector<2x32xf32>
    %338 = math.tanh %337 : vector<2x32xf32>
    %339 = arith.mulf %334, %338 : vector<2x32xf32>
    %cst_43 = arith.constant dense<0.000000e+00> : vector<2x128xf32>
    %340 = tpu.matmul %314, %6, %cst_43 {dimension_numbers = #tpu.dot_dimension_numbers<[1], [0], [0], [1], [0, 0, 1, 1], [], []>} : vector<2x32xf32>, vector<32x128xf32>, vector<2x128xf32> -> vector<2x128xf32>
    %341 = arith.addf %320, %340 : vector<2x128xf32>
    %342 = vector.broadcast %8 : vector<1x128xf32> to vector<2x128xf32>
    %343 = arith.addf %341, %342 : vector<2x128xf32>
    %344 = arith.negf %343 : vector<2x128xf32>
    %345 = math.exp %344 : vector<2x128xf32>
    %cst_44 = arith.constant 1.000000e+00 : f32
    %346 = vector.broadcast %cst_44 : f32 to vector<2x128xf32>
    %347 = arith.addf %346, %345 : vector<2x128xf32>
    %348 = arith.divf %346, %347 : vector<2x128xf32>
    %349 = math.tanh %343 : vector<2x128xf32>
    %350 = vector.extract_strided_slice %348 {offsets = [0, 0], sizes = [2, 32], strides = [1, 1]} : vector<2x128xf32> to vector<2x32xf32>
    %351 = vector.extract_strided_slice %348 {offsets = [0, 32], sizes = [2, 32], strides = [1, 1]} : vector<2x128xf32> to vector<2x32xf32>
    %352 = vector.extract_strided_slice %349 {offsets = [0, 64], sizes = [2, 32], strides = [1, 1]} : vector<2x128xf32> to vector<2x32xf32>
    %353 = vector.extract_strided_slice %348 {offsets = [0, 96], sizes = [2, 32], strides = [1, 1]} : vector<2x128xf32> to vector<2x32xf32>
    %354 = arith.mulf %351, %312 : vector<2x32xf32>
    %355 = arith.mulf %350, %352 : vector<2x32xf32>
    %356 = arith.addf %354, %355 : vector<2x32xf32>
    %357 = math.tanh %356 : vector<2x32xf32>
    %358 = arith.mulf %353, %357 : vector<2x32xf32>
    %359 = arith.addf %315, %339 : vector<2x32xf32>
    %360 = arith.addf %316, %358 : vector<2x32xf32>
    %361 = arith.maximumf %317, %339 : vector<2x32xf32>
    %362 = arith.maximumf %318, %358 : vector<2x32xf32>
    %cst_45 = arith.constant 1.250000e-01 : f32
    %363 = vector.broadcast %cst_45 : f32 to vector<2x32xf32>
    %364 = arith.mulf %359, %363 : vector<2x32xf32>
    %cst_46 = arith.constant 1.250000e-01 : f32
    %365 = vector.broadcast %cst_46 : f32 to vector<2x32xf32>
    %366 = arith.mulf %360, %365 : vector<2x32xf32>
    %c0_47 = arith.constant 0 : index
    %c0_48 = arith.constant 0 : index
    %367 = vector.load %arg7[%c0_47, %c0_48] : memref<128x32xf32, #tpu.memory_space<vmem>>, vector<32x32xf32>
    %cst_49 = arith.constant dense<0.000000e+00> : vector<2x32xf32>
    %368 = tpu.matmul %364, %367, %cst_49 {dimension_numbers = #tpu.dot_dimension_numbers<[1], [0], [0], [1], [0, 0, 1, 1], [], []>} : vector<2x32xf32>, vector<32x32xf32>, vector<2x32xf32> -> vector<2x32xf32>
    %c32 = arith.constant 32 : index
    %c0_50 = arith.constant 0 : index
    %369 = vector.load %arg7[%c32, %c0_50] : memref<128x32xf32, #tpu.memory_space<vmem>>, vector<32x32xf32>
    %cst_51 = arith.constant dense<0.000000e+00> : vector<2x32xf32>
    %370 = tpu.matmul %366, %369, %cst_51 {dimension_numbers = #tpu.dot_dimension_numbers<[1], [0], [0], [1], [0, 0, 1, 1], [], []>} : vector<2x32xf32>, vector<32x32xf32>, vector<2x32xf32> -> vector<2x32xf32>
    %371 = arith.addf %368, %370 : vector<2x32xf32>
    %c64 = arith.constant 64 : index
    %c0_52 = arith.constant 0 : index
    %372 = vector.load %arg7[%c64, %c0_52] : memref<128x32xf32, #tpu.memory_space<vmem>>, vector<32x32xf32>
    %cst_53 = arith.constant dense<0.000000e+00> : vector<2x32xf32>
    %373 = tpu.matmul %361, %372, %cst_53 {dimension_numbers = #tpu.dot_dimension_numbers<[1], [0], [0], [1], [0, 0, 1, 1], [], []>} : vector<2x32xf32>, vector<32x32xf32>, vector<2x32xf32> -> vector<2x32xf32>
    %374 = arith.addf %371, %373 : vector<2x32xf32>
    %c96 = arith.constant 96 : index
    %c0_54 = arith.constant 0 : index
    %375 = vector.load %arg7[%c96, %c0_54] : memref<128x32xf32, #tpu.memory_space<vmem>>, vector<32x32xf32>
    %cst_55 = arith.constant dense<0.000000e+00> : vector<2x32xf32>
    %376 = tpu.matmul %362, %375, %cst_55 {dimension_numbers = #tpu.dot_dimension_numbers<[1], [0], [0], [1], [0, 0, 1, 1], [], []>} : vector<2x32xf32>, vector<32x32xf32>, vector<2x32xf32> -> vector<2x32xf32>
    %377 = arith.addf %374, %376 : vector<2x32xf32>
    %c0_56 = arith.constant 0 : index
    %c0_57 = arith.constant 0 : index
    %378 = vector.load %arg8[%c0_56, %c0_57] : memref<1x32xf32, #tpu.memory_space<vmem>>, vector<1x32xf32>
    %379 = vector.broadcast %378 : vector<1x32xf32> to vector<2x32xf32>
    %380 = arith.addf %377, %379 : vector<2x32xf32>
    %cst_58 = arith.constant 0.000000e+00 : f32
    %381 = vector.broadcast %cst_58 : f32 to vector<2x32xf32>
    %382 = arith.maximumf %380, %381 : vector<2x32xf32>
    %c0_59 = arith.constant 0 : index
    %c0_60 = arith.constant 0 : index
    %383 = vector.load %arg9[%c0_59, %c0_60] : memref<32x4xf32, #tpu.memory_space<vmem>>, vector<32x4xf32>
    %cst_61 = arith.constant dense<0.000000e+00> : vector<2x4xf32>
    %384 = tpu.matmul %382, %383, %cst_61 {dimension_numbers = #tpu.dot_dimension_numbers<[1], [0], [0], [1], [0, 0, 1, 1], [], []>} : vector<2x32xf32>, vector<32x4xf32>, vector<2x4xf32> -> vector<2x4xf32>
    %c0_62 = arith.constant 0 : index
    %c0_63 = arith.constant 0 : index
    %385 = vector.load %arg10[%c0_62, %c0_63] : memref<1x4xf32, #tpu.memory_space<vmem>>, vector<1x4xf32>
    %386 = vector.broadcast %385 : vector<1x4xf32> to vector<2x4xf32>
    %387 = arith.addf %384, %386 : vector<2x4xf32>
    %c0_64 = arith.constant 0 : index
    %c0_65 = arith.constant 0 : index
    %388 = vector.load %arg11[%c0_64, %c0_65] : memref<2x4xf32, #tpu.memory_space<vmem>>, vector<2x4xf32>
    tpu.vector_store %arg11[%c0_64, %c0_65], %387 {strides = array<i32>} : memref<2x4xf32, #tpu.memory_space<vmem>>, vector<2x4xf32>,
    return
  }
  func.func @transform_0(%arg0: i32) -> (i32, i32) {
    %c0_i32 = arith.constant 0 : i32
    %c0_i32_0 = arith.constant 0 : i32
    %c0_i32_1 = arith.constant 0 : i32
    return %c0_i32, %c0_i32_0 : i32, i32
  }
  func.func @transform_1(%arg0: i32) -> (i32, i32) {
    %c0_i32 = arith.constant 0 : i32
    %c0_i32_0 = arith.constant 0 : i32
    %c0_i32_1 = arith.constant 0 : i32
    return %c0_i32, %c0_i32_0 : i32, i32
  }
  func.func @transform_2(%arg0: i32) -> (i32, i32) {
    %c0_i32 = arith.constant 0 : i32
    %c0_i32_0 = arith.constant 0 : i32
    %c0_i32_1 = arith.constant 0 : i32
    return %c0_i32, %c0_i32_0 : i32, i32
  }
  func.func @transform_3(%arg0: i32) -> (i32, i32) {
    %c0_i32 = arith.constant 0 : i32
    %c0_i32_0 = arith.constant 0 : i32
    %c0_i32_1 = arith.constant 0 : i32
    return %c0_i32, %c0_i32_0 : i32, i32
  }
  func.func @transform_4(%arg0: i32) -> (i32, i32) {
    %c0_i32 = arith.constant 0 : i32
    %c0_i32_0 = arith.constant 0 : i32
    %c0_i32_1 = arith.constant 0 : i32
    return %c0_i32, %c0_i32_0 : i32, i32
  }
  func.func @transform_5(%arg0: i32) -> (i32, i32) {
    %c0_i32 = arith.constant 0 : i32
    %c0_i32_0 = arith.constant 0 : i32
    %c0_i32_1 = arith.constant 0 : i32
    return %c0_i32, %c0_i32_0 : i32, i32
  }
  func.func @transform_6(%arg0: i32) -> (i32, i32) {
    %c0_i32 = arith.constant 0 : i32
    %c0_i32_0 = arith.constant 0 : i32
    %c0_i32_1 = arith.constant 0 : i32
    return %c0_i32, %c0_i32_0 : i32, i32
  }
  func.func @transform_7(%arg0: i32) -> (i32, i32) {
    %c0_i32 = arith.constant 0 : i32
    %c0_i32_0 = arith.constant 0 : i32
    %c0_i32_1 = arith.constant 0 : i32
    return %c0_i32, %c0_i32_0 : i32, i32
  }
  func.func @transform_8(%arg0: i32) -> (i32, i32) {
    %c0_i32 = arith.constant 0 : i32
    %c0_i32_0 = arith.constant 0 : i32
    %c0_i32_1 = arith.constant 0 : i32
    return %c0_i32, %c0_i32_0 : i32, i32
  }
  func.func @transform_9(%arg0: i32) -> (i32, i32) {
    %c0_i32 = arith.constant 0 : i32
    %c0_i32_0 = arith.constant 0 : i32
    %c0_i32_1 = arith.constant 0 : i32
    return %c0_i32, %c0_i32_0 : i32, i32
  }
  func.func @transform_10(%arg0: i32) -> (i32, i32) {
    %c0_i32 = arith.constant 0 : i32
    %c0_i32_0 = arith.constant 0 : i32
    %c0_i32_1 = arith.constant 0 : i32
    return %c0_i32, %c0_i32_0 : i32, i32
  }
}

</mosaic_0001>

<bundles_post_ra>
// kernel: bilstm_forward.1
= control target key start
LH: loop header
LB: loop body
LE: loop exit
PB: predicated region body
PF: predicated region fallthrough
CT: control target
= control target key end

     0   :  { %v3235_v7 = vmov 0.0|0.0   ;;  %vm3236_vm0 = vmmov 0   ;;  %v3237_v8 = vmov 0.0   ;;  %s4058_s0 = inlined_call_operand.vmem [shape: f32[16,300], index: 0, kind: input, shape index: {}]   ;;  %s4059_s1 = inlined_call_operand.vmem [shape: f32[300,256], index: 1, kind: input, shape index: {}]   ;;  %s4060_s2 = inlined_call_operand.vmem [shape: f32[32,128], index: 2, kind: input, shape index: {}]   ;;  %s4061_s3 = inlined_call_operand.vmem [shape: f32[32,128], index: 3, kind: input, shape index: {}]   ;;  %s4062_s4 = inlined_call_operand.vmem [shape: f32[1,128], index: 4, kind: input, shape index: {}]   ;;  %s4063_s5 = inlined_call_operand.vmem [shape: f32[1,128], index: 5, kind: input, shape index: {}]   ;;  %s4064_s6 = inlined_call_operand.vmem [shape: f32[128,32], index: 6, kind: input, shape index: {}]   ;;  %s4065_s7 = inlined_call_operand.vmem [shape: f32[1,32], index: 7, kind: input, shape index: {}]   ;;  %s4066_s8 = inlined_call_operand.vmem [shape: f32[32,4], index: 8, kind: input, shape index: {}]   ;;  %s4067_s9 = inlined_call_operand.vmem [shape: f32[1,4], index: 9, kind: input, shape index: {}]   ;;  %s4068_s10 = inlined_call_operand.hbm [shape: f32[2,4], index: 10, kind: output, shape index: {}]  }
   0x1   :  { %v43_v0 = vld [vmem:[%s4059_s1 + $0x8] sm:$0xff]  ;;  %v45_v1 = vld [vmem:[%s4059_s1 + $0x18] sm:$0xff]  ;;  %v42_v2 = vld [vmem:[%s4059_s1] sm:$0xff]  ;;  %2946 = vmatprep.subr.bf16.mxu1 %v3235_v7  ;;  %2645 = vmatprep.mubr.msk.f32.mxu1 %vm3236_vm0, %v3237_v8 }
   0x2   :  { %v2868_v3 = vpack.c.bf16 %v45_v1, %v43_v0  ;;  %v44_v4 = vld [vmem:[%s4059_s1 + $0x10] sm:$0xff]  ;;  %v47_v5 = vld [vmem:[%s4059_s1 + $0x28] sm:$0xff]  ;;  %v49_v6 = vld [vmem:[%s4059_s1 + $0x38] sm:$0xff] }
   0x3   :  { %v2870_v9 = vpack.c.bf16 %v44_v4, %v42_v2  ;;  %v2872_v10 = vpack.c.bf16 %v49_v6, %v47_v5  ;;  %v46_v11 = vld [vmem:[%s4059_s1 + $0x20] sm:$0xff]  ;;  %v48_v12 = vld [vmem:[%s4059_s1 + $0x30] sm:$0xff]  ;;  %v51_v13 = vld [vmem:[%s4059_s1 + $0x48] sm:$0xff] }
   0x4   :  { %2869 = vmatprep.subr.bf16.mxu0 %v2868_v3  ;;  %v53_v14 = vld [vmem:[%s4059_s1 + $0x58] sm:$0xff]  ;;  %v2874_v15 = vpack.c.bf16 %v48_v12, %v46_v11  ;;  %v50_v17 = vld [vmem:[%s4059_s1 + $0x40] sm:$0xff]  ;;  %v52_v18 = vld [vmem:[%s4059_s1 + $0x50] sm:$0xff] }
   0x5   :  { %2871 = vmatpush1.bf16.msra.mxu0 %v2870_v9  ;;  %v2876_v16 = vpack.c.bf16 %v53_v14, %v51_v13  ;;  %v55_v19 = vld [vmem:[%s4059_s1 + $0x68] sm:$0xff]  ;;  %v57_v20 = vld [vmem:[%s4059_s1 + $0x78] sm:$0xff]  ;;  %v2878_v21 = vpack.c.bf16 %v52_v18, %v50_v17  ;;  %v54_v23 = vld [vmem:[%s4059_s1 + $0x60] sm:$0xff] }
   0x6   :  { %2873 = vmatprep.subr.bf16.mxu0 %v2872_v10  ;;  %v2880_v22 = vpack.c.bf16 %v57_v20, %v55_v19  ;;  %v56_v24 = vld [vmem:[%s4059_s1 + $0x70] sm:$0xff]  ;;  %v59_v25 = vld [vmem:[%s4059_s1 + $0x88] sm:$0xff]  ;;  %v61_v26 = vld [vmem:[%s4059_s1 + $0x98] sm:$0xff] }
   0x7   :  { %v2882_v27 = vpack.c.bf16 %v56_v24, %v54_v23  ;;  %v2884_v28 = vpack.c.bf16 %v61_v26, %v59_v25  ;;  %v58_v29 = vld [vmem:[%s4059_s1 + $0x80] sm:$0xff]  ;;  %v60_v30 = vld [vmem:[%s4059_s1 + $0x90] sm:$0xff]  ;;  %v63_v31 = vld [vmem:[%s4059_s1 + $0xa8] sm:$0xff] }
   0x8   :  { %v65_v32 = vld [vmem:[%s4059_s1 + $0xb8] sm:$0xff]  ;;  %v2886_v33 = vpack.c.bf16 %v60_v30, %v58_v29  ;;  %v62_v35 = vld [vmem:[%s4059_s1 + $0xa0] sm:$0xff]  ;;  %v64_v36 = vld [vmem:[%s4059_s1 + $0xb0] sm:$0xff] }
   0x9   :  { %2875 = vmatpush1.bf16.msra.mxu0 %v2874_v15  ;;  %v2888_v34 = vpack.c.bf16 %v65_v32, %v63_v31  ;;  %v67_v37 = vld [vmem:[%s4059_s1 + $0xc8] sm:$0xff]  ;;  %v69_v38 = vld [vmem:[%s4059_s1 + $0xd8] sm:$0xff]  ;;  %v2890_v39 = vpack.c.bf16 %v64_v36, %v62_v35  ;;  %v66_v40 = vld [vmem:[%s4059_s1 + $0xc0] sm:$0xff] }
   0xa   :  { %2877 = vmatprep.subr.bf16.mxu0 %v2876_v16  ;;  %v2892_v41 = vpack.c.bf16 %v69_v38, %v67_v37  ;;  %v68_v42 = vld [vmem:[%s4059_s1 + $0xd0] sm:$0xff]  ;;  %v71_v43 = vld [vmem:[%s4059_s1 + $0xe8] sm:$0xff]  ;;  %v73_v45 = vld [vmem:[%s4059_s1 + $0xf8] sm:$0xff] }
   0xb   :  { %v37_v44 = vld [vmem:[%s4058_s0 + $0x8] sm:$0xff]  ;;  %v286_v46 = vld [vmem:[%s4060_s2] sm:$0xff]  ;;  %v2894_v49 = vpack.c.bf16 %v68_v42, %v66_v40  ;;  %v288_v50 = vld [vmem:[%s4060_s2 + $0x10] sm:$0xff]  ;;  %v2896_v51 = vpack.c.bf16 %v73_v45, %v71_v43 }
   0xc   :  { %196 = vmatprep.mubr.f32.mxu0 %v37_v44  ;;  %v287_v47 = vld [vmem:[%s4060_s2 + $0x8] sm:$0xff]  ;;  %v70_v52 = vld [vmem:[%s4059_s1 + $0xe0] sm:$0xff]  ;;  %v72_v53 = vld [vmem:[%s4059_s1 + $0xf0] sm:$0xff] }
   0xd   :  { %2879 = vmatpush1.bf16.msra.mxu0 %v2878_v21  ;;  %v3399_v48 = vpack.c.bf16 %v287_v47, %v286_v46  ;;  %v289_v54 = vld [vmem:[%s4060_s2 + $0x18] sm:$0xff]  ;;  %v75_v55 = vld [vmem:[%s4059_s1 + $0x108] sm:$0xff]  ;;  %v290_v58 = vld [vmem:[%s4061_s3] sm:$0xff]  ;;  %v2898_v59 = vpack.c.bf16 %v72_v53, %v70_v52 }
   0xe   :  { %2881 = vmatprep.subr.bf16.mxu0 %v2880_v22  ;;  %v77_v56 = vld [vmem:[%s4059_s1 + $0x118] sm:$0xff]  ;;  %v3421_v57 = vpack.c.bf16 %v289_v54, %v288_v50  ;;  %v74_v60 = vld [vmem:[%s4059_s1 + $0x100] sm:$0xff]  ;;  %v291_v61 = vld [vmem:[%s4061_s3 + $0x8] sm:$0xff] }
   0xf   :  { %2948 = vmatpush3.bf16.msra.mxu1 %v3399_v48  ;;  %v2900_v62 = vpack.c.bf16 %v77_v56, %v75_v55  ;;  %v76_v63 = vld [vmem:[%s4059_s1 + $0x110] sm:$0xff]  ;;  %v79_v0 = vld [vmem:[%s4059_s1 + $0x128] sm:$0xff]  ;;  %v81_v1 = vld [vmem:[%s4059_s1 + $0x138] sm:$0xff]  ;;  %v3442_v2 = vpack.c.bf16 %v291_v61, %v290_v58 }
  0x10   :  { %2949 = vmatprep.subr.bf16.mxu1 %v3235_v7  ;;  %v292_v3 = vld [vmem:[%s4061_s3 + $0x10] sm:$0xff]  ;;  %v293_v4 = vld [vmem:[%s4061_s3 + $0x18] sm:$0xff] }
  0x11   :  { %2883 = vmatpush1.bf16.msra.mxu0 %v2882_v27 }
  0x12   :  { %2885 = vmatprep.subr.bf16.mxu0 %v2884_v28 }
  0x13   :  { %2951 = vmatpush3.bf16.msra.mxu1 %v3421_v57 }
  0x14   :  { %2952 = vmatprep.subr.bf16.mxu1 %v3235_v7 }
  0x15   :  { %2887 = vmatpush1.bf16.msra.mxu0 %v2886_v33 }
  0x16   :  { %2889 = vmatprep.subr.bf16.mxu0 %v2888_v34 }
  0x19   :  { %2891 = vmatpush1.bf16.msra.mxu0 %v2890_v39 }
  0x1a   :  { %2893 = vmatprep.subr.bf16.mxu0 %v2892_v41 }
  0x1d   :  { %2895 = vmatpush1.bf16.msra.mxu0 %v2894_v49 }
  0x1e   :  { %2897 = vmatprep.subr.bf16.mxu0 %v2896_v51 }
  0x1f   :  { %15 = vsyncpa [#allocation3], 0  ;;  %v2902_v5 = vpack.c.bf16 %v76_v63, %v74_v60  ;;  %2646 = vmatmul.mubr.f32.vlgmr.msra.gmra.mrb[0].mxu1 %v3237_v8  ;;  %v2904_v6 = vpack.c.bf16 %v81_v1, %v79_v0  ;;  %v78_v9 = vld [vmem:[%s4059_s1 + $0x120] sm:$0xff]  ;;  %v80_v10 = vld [vmem:[%s4059_s1 + $0x130] sm:$0xff]  ;;  %v3459_v11 = vpack.c.bf16 %v293_v4, %v292_v3  ;;  %vm125_vm1 = vcmask 1043456   ;;  %s3241_s20 = smov [#allocation2]  }
  0x20   :  { %2954 = vmatpush3.bf16.msra.mxu1 %v3442_v2  ;;  %v83_v12 = vld [vmem:[%s4059_s1 + $0x148] sm:$0xff]  ;;  %v85_v13 = vld [vmem:[%s4059_s1 + $0x158] sm:$0xff]  ;;  %2656 = vmatprep.mubr.msk.f32.mxu1 %vm3236_vm0, %v3237_v8  ;;  %v2906_v14 = vpack.c.bf16 %v80_v10, %v78_v9  ;;  %v82_v16 = vld [vmem:[%s4059_s1 + $0x140] sm:$0xff]  ;;  %vm3238_vm2 = vmmov 1   ;;  %vm118_vm4 = vcmask 359424   ;;  %vm296_vm5 = vcmask 261120  }
  0x21   :  { %2899 = vmatpush1.bf16.msra.mxu0 %v2898_v59  ;;  %2955 = vmatprep.subr.bf16.mxu1 %v3235_v7  ;;  %v2908_v15 = vpack.c.bf16 %v85_v13, %v83_v12  ;;  %v84_v17 = vld [vmem:[%s4059_s1 + $0x150] sm:$0xff]  ;;  %v87_v18 = vld [vmem:[%s4059_s1 + $0x168] sm:$0xff]  ;;  %v89_v19 = vld [vmem:[%s4059_s1 + $0x178] sm:$0xff]  ;;  %s2481_s21 = sshll.u32 %s3241_s20, 4  ;;  %vm2473_vm6 = vcmask 25600   ;;  %s2482_s21 = int_to_ptr.vmem [resolvable:$true] %s2481_s21 }
  0x22   :  { %2901 = vmatprep.subr.bf16.mxu0 %v2900_v62  ;;  %v2910_v20 = vpack.c.bf16 %v84_v17, %v82_v16  ;;  %v2912_v21 = vpack.c.bf16 %v89_v19, %v87_v18  ;;  %v86_v22 = vld [vmem:[%s4059_s1 + $0x160] sm:$0xff]  ;;  %v88_v23 = vld [vmem:[%s4059_s1 + $0x170] sm:$0xff]  ;;  %v91_v24 = vld [vmem:[%s4059_s1 + $0x188] sm:$0xff]  ;;  %p3216_p1 = scmp.lt.s32.totalorder %s2482_s21, %s2482_s21 }
  0x23   :  { %v93_v25 = vld [vmem:[%s4059_s1 + $0x198] sm:$0xff]  ;;  %v2914_v26 = vpack.c.bf16 %v88_v23, %v86_v22  ;;  %v90_v28 = vld [vmem:[%s4059_s1 + $0x180] sm:$0xff]  ;;  %v92_v29 = vld [vmem:[%s4059_s1 + $0x190] sm:$0xff] }
  0x24   :  { %2957 = vmatpush3.bf16.msra.mxu1 %v3459_v11  ;;  %v2916_v27 = vpack.c.bf16 %v93_v25, %v91_v24  ;;  %v95_v30 = vld [vmem:[%s4059_s1 + $0x1a8] sm:$0xff]  ;;  %v97_v31 = vld [vmem:[%s4059_s1 + $0x1b8] sm:$0xff]  ;;  %v2918_v32 = vpack.c.bf16 %v92_v29, %v90_v28  ;;  %v94_v34 = vld [vmem:[%s4059_s1 + $0x1a0] sm:$0xff] }
  0x25   :  { %2903 = vmatpush1.bf16.msra.mxu0 %v2902_v5  ;;  %2958 = vmatprep.subr.bf16.mxu1 %v3235_v7  ;;  %v2920_v33 = vpack.c.bf16 %v97_v31, %v95_v30  ;;  %v96_v35 = vld [vmem:[%s4059_s1 + $0x1b0] sm:$0xff]  ;;  %v99_v36 = vld [vmem:[%s4059_s1 + $0x1c8] sm:$0xff]  ;;  %v101_v37 = vld [vmem:[%s4059_s1 + $0x1d8] sm:$0xff] }
  0x26   :  { %2905 = vmatprep.subr.bf16.mxu0 %v2904_v6  ;;  %v2922_v38 = vpack.c.bf16 %v96_v35, %v94_v34  ;;  %v2924_v39 = vpack.c.bf16 %v101_v37, %v99_v36  ;;  %v98_v40 = vld [vmem:[%s4059_s1 + $0x1c0] sm:$0xff]  ;;  %v100_v41 = vld [vmem:[%s4059_s1 + $0x1d0] sm:$0xff]  ;;  %v103_v42 = vld [vmem:[%s4059_s1 + $0x1e8] sm:$0xff] }
  0x27   :  { %2657 = vmatmul.mubr.f32.vlgmr.msra.gmra.mrb[2].mxu1 %v3237_v8  ;;  %v105_v43 = vld [vmem:[%s4059_s1 + $0x1f8] sm:$0xff]  ;;  %v2926_v44 = vpack.c.bf16 %v100_v41, %v98_v40  ;;  %v102_v46 = vld [vmem:[%s4059_s1 + $0x1e0] sm:$0xff]  ;;  %v104_v47 = vld [vmem:[%s4059_s1 + $0x1f0] sm:$0xff] }
  0x28   :  { %2960 = vmatpush3.bf16.msra.mxu1 %v3399_v48  ;;  %2667 = vmatprep.mubr.msk.f32.mxu1 %vm3236_vm0, %v3237_v8  ;;  %v2928_v45 = vpack.c.bf16 %v105_v43, %v103_v42  ;;  %v107_v49 = vld [vmem:[%s4059_s1 + $0x208] sm:$0xff]  ;;  %v109_v50 = vld [vmem:[%s4059_s1 + $0x218] sm:$0xff]  ;;  %v2930_v51 = vpack.c.bf16 %v104_v47, %v102_v46  ;;  %v106_v53 = vld [vmem:[%s4059_s1 + $0x200] sm:$0xff] }
  0x29   :  { %2907 = vmatpush1.bf16.msra.mxu0 %v2906_v14  ;;  %2961 = vmatprep.subr.bf16.mxu1 %v3235_v7  ;;  %v2932_v52 = vpack.c.bf16 %v109_v50, %v107_v49  ;;  %v108_v54 = vld [vmem:[%s4059_s1 + $0x210] sm:$0xff]  ;;  %v111_v55 = vld [vmem:[%s4059_s1 + $0x228] sm:$0xff]  ;;  %v113_v56 = vld [vmem:[%s4059_s1 + $0x238] sm:$0xff] }
  0x2a   :  { %2909 = vmatprep.subr.bf16.mxu0 %v2908_v15  ;;  %v36_v58 = vld [vmem:[%s4058_s0] sm:$0xff]  ;;  %v2934_v59 = vpack.c.bf16 %v108_v54, %v106_v53  ;;  %v2936_v60 = vpack.c.bf16 %v113_v56, %v111_v55  ;;  %v112_v62 = vld [vmem:[%s4059_s1 + $0x230] sm:$0xff]  ;;  %v115_v0 = vld [vmem:[%s4059_s1 + $0x248] sm:$0xff] }
  0x2b   :  { %v110_v61 = vld [vmem:[%s4059_s1 + $0x220] sm:$0xff]  ;;  %v117_v1 = vld [vmem:[%s4059_s1 + $0x258] sm:$0xf]  ;;  %v116_v9 = vld [vmem:[%s4059_s1 + $0x250] sm:$0xf] }
  0x2c   :  { %2963 = vmatpush3.bf16.msra.mxu1 %v3421_v57  ;;  %v40_v63 = vld [vmem:[%s4058_s0 + $0x20] sm:$0xff]  ;;  %v2938_v3 = vpack.c.bf16 %v112_v62, %v110_v61  ;;  %v39_v4 = vld [vmem:[%s4058_s0 + $0x18] sm:$0xff]  ;;  %v2940_v5 = vpack.c.bf16 %v117_v1, %v115_v0  ;;  %vm2941_vm3 = vmpackc.low %vm125_vm1, %vm3238_vm2 }
  0x2d   :  { %2911 = vmatpush1.bf16.msra.mxu0 %v2910_v20  ;;  %2964 = vmatprep.subr.bf16.mxu1 %v3235_v7  ;;  %v114_v6 = vld [vmem:[%s4059_s1 + $0x240] sm:$0xff]  ;;  %v38_v12 = vld [vmem:[%s4058_s0 + $0x10] sm:$0xff]  ;;  %v41_v13 = vld [vmem:[%s4058_s0 + $0x28] sm:$0xff]  ;;  %s3211_s1 = scalar_lea.vmem %s2482_s21, 32 }
  0x2e   :  { %2913 = vmatprep.subr.bf16.mxu0 %v2912_v21  ;;  %v2943_v10 = vpack.c.bf16 %v116_v9, %v114_v6  ;;  %v3610_v19 = vld [vmem:[%s4062_s4] ss:$0 sm:$0xff]  ;;  %s3239_s4 = smov 64   ;;  %p3212_p0 = scmp.ne.s32.totalorder %s2482_s21, %s3211_s1 }
  0x2f   :  { %p3217_p2 = scmp.lt.s32.totalorder %s3211_s1, %s3211_s1 }
  0x31   :  { %2915 = vmatpush1.bf16.msra.mxu0 %v2914_v26  ;;  %v3623_v26 = vld [vmem:[%s4063_s5] ss:$0 sm:$0xff]  ;;  %s3240_s5 = smov 32   ;;  %p3218_p3 = por %p3217_p2, %p3216_p1 }
  0x32   :  { %2917 = vmatprep.subr.bf16.mxu0 %v2916_v27 }
  0x33   :  { %p3219_p4 = pnand %p3218_p3, %p3212_p0 }
  0x35   :  { %2919 = vmatpush1.bf16.msra.mxu0 %v2918_v32 }
  0x36   :  { %2921 = vmatprep.subr.bf16.mxu0 %v2920_v33 }
  0x39   :  { %2923 = vmatpush1.bf16.msra.mxu0 %v2922_v38 }
  0x3a   :  { %2925 = vmatprep.subr.bf16.mxu0 %v2924_v39 }
  0x3d   :  { %2927 = vmatpush1.bf16.msra.mxu0 %v2926_v44 }
  0x3e   :  { %2929 = vmatprep.subr.bf16.mxu0 %v2928_v45 }
  0x41   :  { %2931 = vmatpush1.bf16.msra.mxu0 %v2930_v51 }
  0x42   :  { %2933 = vmatprep.subr.bf16.mxu0 %v2932_v52 }
  0x44   :  { %197 = vmatmul.mubr.f32.vlgmr.msra.gmra.mrb[0].mxu0 %v36_v58 }
  0x45   :  { %2935 = vmatpush1.bf16.msra.mxu0 %v2934_v59  ;;  %202 = vmatprep.mubr.f32.mxu0 %v40_v63 }
  0x46   :  { %2937 = vmatprep.subr.bf16.mxu0 %v2936_v60 }
  0x48   :  { %203 = vmatmul.mubr.f32.gmra.mrb[2].mxu0 %v39_v4 }
  0x49   :  { %2939 = vmatpush1.bf16.msra.mxu0 %v2938_v3  ;;  %273 = vmatprep.mubr.f32.mxu0 %v3237_v8 }
  0x4a   :  { %2942 = vmatprep.subr.msk.bf16.mxu0 %vm2941_vm3, %v2940_v5 }
  0x4d   :  { %2945 = vmatpush1.bf16.msk.msra.mxu0 %vm2941_vm3, %v2943_v10 }
  0x4e   :  { %3006 = vmatprep.subr.bf16.mxu0 %v3235_v7 }
  0x50   :  { %2491 = vmatmul.mubr.msk.f32.vlgmr.msra.gmra.mrb[0].mxu0 %vm118_vm4, %v38_v12 }
  0x51   :  { %279 = vmatprep.mubr.f32.mxu0 %v3237_v8  ;;  %3008 = vmatpush3.bf16.msra.mxu0 %v3399_v48 }
  0x52   :  { %3009 = vmatprep.subr.bf16.mxu0 %v3235_v7 }
  0x54   :  { %2492 = vmatmul.mubr.msk.f32.gmra.mrb[2].mxu0 %vm118_vm4, %v41_v13 }
  0x55   :  { %3011 = vmatpush3.bf16.msra.mxu0 %v3421_v57  ;;  %2755 = vmatprep.mubr.msk.f32.mxu0 %vm3236_vm0, %v3237_v8 }
  0x56   :  { %3018 = vmatprep.subr.bf16.mxu0 %v3235_v7 }
  0xf2   :  { %v366_v14 = vpop.f32.mrb[0].mxu1 }
  0xf3   :  { %v2647_v15 = vpop.f32.mrb[1].mxu1 }
  0xfa   :  { %v468_v16 = vpop.f32.mrb[2].mxu1 }
  0xfb   :  { %v2658_v17 = vpop.f32.mrb[3].mxu1  ;;  %v473_v22 = vrot.slane %v468_v16, 2 }
 0x123   :  { %v3605_v18 = vpop.f32.mrb[0].mxu0 }
 0x124   :  { %v370_v20 = vadd.f32 %v366_v14, %v3605_v18  ;;  %v3613_v21 = vpop.f32.mrb[1].mxu0 }
 0x126   :  { %v377_v23 = vadd.f32 %v3610_v19, %v370_v20 }
 0x127   :  { %v3616_v24 = vpop.f32.mrb[2].mxu0 }
 0x128   :  { %3083 = vtanh.f32 %v377_v23  ;;  %v3618_v25 = vpop.f32.mrb[3].mxu0  ;;  %v2494_v31 = vmul.f32 -1.442695, %v377_v23 }
 0x129   :  { %v475_v27 = vadd.f32 %v473_v22, %v3618_v25 }
 0x12b   :  { %v482_v28 = vadd.f32 %v3623_v26, %v475_v27 }
 0x12d   :  { %3085 = vtanh.f32 %v482_v28  ;;  %v2496_v32 = vmul.f32 -1.442695, %v482_v28 }
 0x12e   :  { %3087 = vpow2.f32 %v2494_v31 }
 0x12f   :  { %3089 = vpow2.f32 %v2496_v32 }
 0x132   :  { %v3084_v29 = vpop.eup %3083 }
 0x133   :  { %387 = vrot.lane.b32.xlu0 %v3084_v29, %s3239_s4 }
 0x137   :  { %v3086_v30 = vpop.eup %3085 }
 0x138   :  { %492 = vrot.lane.b32.xlu0 %v3086_v30, %s3239_s4  ;;  %v3088_v33 = vpop.eup %3087 }
 0x139   :  { %v381_v34 = vadd.f32 1.0, %v3088_v33  ;;  %v3090_v35 = vpop.eup %3089 }
 0x13a   :  { %v486_v36 = vadd.f32 1.0, %v3090_v35 }
 0x13b   :  { %3091 = vrcp.f32 %v381_v34 }
 0x13c   :  { %3093 = vrcp.f32 %v486_v36 }
 0x145   :  { %v3092_v37 = vpop.eup %3091 }
 0x146   :  { %v3094_v40 = vpop.eup %3093  ;;  %v385_v43 = vmul.f32 0.0, %v3092_v37 }
 0x147   :  { %v490_v46 = vmul.f32 0.0, %v3094_v40 }
 0x1a5   :  { %v388_v38 = vpop.permute.xlu0 %387 }
 0x1a6   :  { %v390_v39 = vmul.f32 %v3092_v37, %v388_v38 }
 0x1a8   :  { %392 = vrot.lane.b32.xlu1 %v390_v39, %s3240_s5 }
 0x1aa   :  { %v493_v41 = vpop.permute.xlu0 %492 }
 0x1ab   :  { %v495_v42 = vmul.f32 %v3094_v40, %v493_v41 }
 0x1ad   :  { %497 = vrot.lane.b32.xlu1 %v495_v42, %s3240_s5 }
 0x21a   :  { %v393_v44 = vpop.permute.xlu1 %392 }
 0x21b   :  { %v3631_v45 = vadd.f32 %v393_v44, %v385_v43 }
 0x21d   :  { %3095 = vtanh.f32 %v3631_v45  ;;  %v597_v30 = vrot.slane %v3631_v45, 6 }
 0x21f   :  { %v498_v47 = vpop.permute.xlu1 %497 }
 0x220   :  { %v3634_v49 = vadd.f32 %v498_v47, %v490_v46 }
 0x222   :  { %3097 = vtanh.f32 %v3634_v49  ;;  %v705_v34 = vrot.slane %v3634_v49, 2 }
 0x227   :  { %v3096_v50 = vpop.eup %3095 }
 0x228   :  { %398 = vrot.lane.b32.xlu0 %v3096_v50, %s3239_s4 }
 0x22c   :  { %v3098_v51 = vpop.eup %3097 }
 0x22d   :  { %503 = vrot.lane.b32.xlu1 %v3098_v51, %s3239_s4 }
 0x29a   :  { %v399_v52 = vpop.permute.xlu0 %398 }
 0x29b   :  { %v3639_v53 = vmul.f32 %v3092_v37, %v399_v52 }
 0x29d   :  { %510 = vrot.lane.b32.xlu0 %v3639_v53, %s3240_s5 }
 0x29f   :  { %v504_v54 = vpop.permute.xlu1 %503 }
 0x2a0   :  { %v3643_v55 = vmul.f32 %v3094_v40, %v504_v54 }
 0x2a2   :  { %v617_v56 = vrot.slane %v3643_v55, 6 }
 0x2a4   :  { %618 = vrot.lane.b32.xlu1 %v617_v56, %s3240_s5 }
 0x30f   :  { %v511_v58 = vpop.permute.xlu0 %510 }
 0x310   :  { %2668 = vmatmul.mubr.msk.f32.vlgmr.msra.gmra.mrb[4].mxu1 %vm296_vm5, %v511_v58 }
 0x311   :  { %2966 = vmatpush3.bf16.msra.mxu1 %v3442_v2  ;;  %2678 = vmatprep.mubr.msk.f32.mxu1 %vm3236_vm0, %v3237_v8 }
 0x312   :  { %2967 = vmatprep.subr.bf16.mxu1 %v3235_v7 }
 0x315   :  { %2969 = vmatpush3.bf16.msra.mxu1 %v3459_v11 }
 0x316   :  { %v619_v59 = vpop.permute.xlu1 %618  ;;  %2970 = vmatprep.subr.bf16.mxu1 %v3235_v7 }
 0x318   :  { %2679 = vmatmul.mubr.msk.f32.vlgmr.msra.gmra.mrb[6].mxu1 %vm296_vm5, %v619_v59 }
 0x319   :  { %2972 = vmatpush3.bf16.msra.mxu1 %v3399_v48  ;;  %2689 = vmatprep.mubr.msk.f32.mxu1 %vm3236_vm0, %v3237_v8 }
 0x31a   :  { %2973 = vmatprep.subr.bf16.mxu1 %v3235_v7 }
 0x31d   :  { %2975 = vmatpush3.bf16.msra.mxu1 %v3421_v57 }
 0x31e   :  { %2976 = vmatprep.subr.bf16.mxu1 %v3235_v7 }
 0x3e3   :  { %v580_v60 = vpop.f32.mrb[4].mxu1 }
 0x3e4   :  { %v585_v61 = vrot.slane %v580_v60, 6  ;;  %v2669_v62 = vpop.f32.mrb[5].mxu1 }
 0x3e6   :  { %v587_v63 = vadd.f32 %v585_v61, %v3605_v18 }
 0x3e8   :  { %v588_v0 = vadd.f32 %v3610_v19, %v587_v63 }
 0x3ea   :  { %3099 = vtanh.f32 %v588_v0  ;;  %v2498_v12 = vmul.f32 -1.442695, %v588_v0 }
 0x3eb   :  { %v688_v1 = vpop.f32.mrb[6].mxu1 }
 0x3ec   :  { %v693_v3 = vrot.slane %v688_v1, 4  ;;  %v2680_v4 = vpop.f32.mrb[7].mxu1 }
 0x3ee   :  { %v695_v5 = vadd.f32 %v693_v3, %v3618_v25 }
 0x3f0   :  { %v696_v6 = vadd.f32 %v3623_v26, %v695_v5 }
 0x3f2   :  { %3101 = vtanh.f32 %v696_v6  ;;  %v2500_v13 = vmul.f32 -1.442695, %v696_v6 }
 0x3f3   :  { %3103 = vpow2.f32 %v2498_v12 }
 0x3f4   :  { %v3100_v9 = vpop.eup %3099  ;;  %3105 = vpow2.f32 %v2500_v13 }
 0x3f5   :  { %601 = vrot.lane.b32.xlu0 %v3100_v9, %s3239_s4 }
 0x3fc   :  { %v3102_v10 = vpop.eup %3101 }
 0x3fd   :  { %709 = vrot.lane.b32.xlu1 %v3102_v10, %s3239_s4  ;;  %v3104_v14 = vpop.eup %3103 }
 0x3fe   :  { %v592_v15 = vadd.f32 1.0, %v3104_v14  ;;  %v3106_v16 = vpop.eup %3105 }
 0x3ff   :  { %v700_v17 = vadd.f32 1.0, %v3106_v16 }
 0x400   :  { %3107 = vrcp.f32 %v592_v15 }
 0x401   :  { %3109 = vrcp.f32 %v700_v17 }
 0x40a   :  { %v3108_v20 = vpop.eup %3107 }
 0x40b   :  { %v3110_v27 = vpop.eup %3109  ;;  %v599_v31 = vmul.f32 %v3108_v20, %v597_v30 }
 0x40c   :  { %v707_v35 = vmul.f32 %v3110_v27, %v705_v34 }
 0x467   :  { %v602_v22 = vpop.permute.xlu0 %601 }
 0x468   :  { %v604_v23 = vmul.f32 %v3108_v20, %v602_v22 }
 0x46a   :  { %606 = vrot.lane.b32.xlu0 %v604_v23, %s3240_s5 }
 0x46f   :  { %v710_v28 = vpop.permute.xlu1 %709 }
 0x470   :  { %v712_v29 = vmul.f32 %v3110_v27, %v710_v28 }
 0x472   :  { %714 = vrot.lane.b32.xlu1 %v712_v29, %s3240_s5 }
 0x4dc   :  { %v607_v32 = vpop.permute.xlu0 %606 }
 0x4dd   :  { %v3670_v33 = vadd.f32 %v607_v32, %v599_v31 }
 0x4df   :  { %3111 = vtanh.f32 %v3670_v33  ;;  %v821_v16 = vrot.slane %v3670_v33, 6 }
 0x4e4   :  { %v715_v36 = vpop.permute.xlu1 %714 }
 0x4e5   :  { %v3674_v37 = vadd.f32 %v715_v36, %v707_v35 }
 0x4e7   :  { %3113 = vtanh.f32 %v3674_v37  ;;  %v928_v23 = vrot.slane %v3674_v37, 2 }
 0x4e9   :  { %v3112_v38 = vpop.eup %3111 }
 0x4ea   :  { %612 = vrot.lane.b32.xlu0 %v3112_v38, %s3239_s4 }
 0x4f1   :  { %v3114_v39 = vpop.eup %3113 }
 0x4f2   :  { %720 = vrot.lane.b32.xlu1 %v3114_v39, %s3239_s4 }
 0x55c   :  { %v613_v40 = vpop.permute.xlu0 %612 }
 0x55d   :  { %v615_v41 = vmul.f32 %v3108_v20, %v613_v40 }
 0x55f   :  { %v3679_v42 = vrot.slane %v615_v41, 2 }
 0x561   :  { %734 = vrot.lane.b32.xlu0 %v3679_v42, %s3240_s5  ;;  %v727_v34 = vadd.f32 %v3679_v42, %v3639_v53  ;;  %v732_v35 = vmax.f32 %v3639_v53, %v3679_v42 }
 0x564   :  { %v721_v43 = vpop.permute.xlu1 %720 }
 0x565   :  { %v3683_v44 = vmul.f32 %v3110_v27, %v721_v43 }
 0x567   :  { %v840_v45 = vrot.slane %v3683_v44, 4  ;;  %v729_v39 = vrot.slane %v3683_v44, 6 }
 0x569   :  { %841 = vrot.lane.b32.xlu1 %v840_v45, %s3240_s5  ;;  %v731_v43 = vadd.f32 %v729_v39, %v3643_v55  ;;  %v733_v45 = vmax.f32 %v3643_v55, %v729_v39 }
 0x5d3   :  { %v735_v46 = vpop.permute.xlu0 %734 }
 0x5d4   :  { %2690 = vmatmul.mubr.msk.f32.vlgmr.msra.gmra.mrb[8].mxu1 %vm296_vm5, %v735_v46 }
 0x5d5   :  { %2978 = vmatpush3.bf16.msra.mxu1 %v3442_v2  ;;  %2700 = vmatprep.mubr.msk.f32.mxu1 %vm3236_vm0, %v3237_v8 }
 0x5d6   :  { %2979 = vmatprep.subr.bf16.mxu1 %v3235_v7 }
 0x5d9   :  { %2981 = vmatpush3.bf16.msra.mxu1 %v3459_v11 }
 0x5da   :  { %2982 = vmatprep.subr.bf16.mxu1 %v3235_v7 }
 0x5db   :  { %v842_v47 = vpop.permute.xlu1 %841 }
 0x5dc   :  { %2701 = vmatmul.mubr.msk.f32.vlgmr.msra.gmra.mrb[10].mxu1 %vm296_vm5, %v842_v47 }
 0x5dd   :  { %2984 = vmatpush3.bf16.msra.mxu1 %v3399_v48  ;;  %2711 = vmatprep.mubr.msk.f32.mxu1 %vm3236_vm0, %v3237_v8 }
 0x5de   :  { %2985 = vmatprep.subr.bf16.mxu1 %v3235_v7 }
 0x5e1   :  { %2987 = vmatpush3.bf16.msra.mxu1 %v3421_v57 }
 0x5e2   :  { %2988 = vmatprep.subr.bf16.mxu1 %v3235_v7 }
 0x6a7   :  { %v804_v49 = vpop.f32.mrb[8].mxu1 }
 0x6a8   :  { %v809_v50 = vrot.slane %v804_v49, 4  ;;  %v2691_v51 = vpop.f32.mrb[9].mxu1 }
 0x6aa   :  { %v811_v52 = vadd.f32 %v809_v50, %v3605_v18 }
 0x6ac   :  { %v812_v54 = vadd.f32 %v3610_v19, %v811_v52 }
 0x6ae   :  { %3115 = vtanh.f32 %v812_v54  ;;  %v2502_v0 = vmul.f32 -1.442695, %v812_v54 }
 0x6af   :  { %v911_v56 = vpop.f32.mrb[10].mxu1 }
 0x6b0   :  { %v916_v58 = vrot.slane %v911_v56, 6  ;;  %v2702_v59 = vpop.f32.mrb[11].mxu1 }
 0x6b2   :  { %v918_v60 = vadd.f32 %v916_v58, %v3618_v25 }
 0x6b4   :  { %v919_v61 = vadd.f32 %v3623_v26, %v918_v60 }
 0x6b6   :  { %3117 = vtanh.f32 %v919_v61  ;;  %v2504_v1 = vmul.f32 -1.442695, %v919_v61 }
 0x6b7   :  { %3119 = vpow2.f32 %v2502_v0 }
 0x6b8   :  { %v3116_v62 = vpop.eup %3115  ;;  %3121 = vpow2.f32 %v2504_v1 }
 0x6b9   :  { %825 = vrot.lane.b32.xlu0 %v3116_v62, %s3239_s4 }
 0x6c0   :  { %v3118_v63 = vpop.eup %3117 }
 0x6c1   :  { %932 = vrot.lane.b32.xlu1 %v3118_v63, %s3239_s4  ;;  %v3120_v3 = vpop.eup %3119 }
 0x6c2   :  { %v816_v4 = vadd.f32 1.0, %v3120_v3  ;;  %v3122_v5 = vpop.eup %3121 }
 0x6c3   :  { %v923_v6 = vadd.f32 1.0, %v3122_v5 }
 0x6c4   :  { %3123 = vrcp.f32 %v816_v4 }
 0x6c5   :  { %3125 = vrcp.f32 %v923_v6 }
 0x6ce   :  { %v3124_v9 = vpop.eup %3123 }
 0x6cf   :  { %v3126_v13 = vpop.eup %3125  ;;  %v823_v17 = vmul.f32 %v3124_v9, %v821_v16 }
 0x6d0   :  { %v930_v27 = vmul.f32 %v3126_v13, %v928_v23 }
 0x72b   :  { %v826_v10 = vpop.permute.xlu0 %825 }
 0x72c   :  { %v828_v12 = vmul.f32 %v3124_v9, %v826_v10 }
 0x72e   :  { %830 = vrot.lane.b32.xlu0 %v828_v12, %s3240_s5 }
 0x733   :  { %v933_v14 = vpop.permute.xlu1 %932 }
 0x734   :  { %v935_v15 = vmul.f32 %v3126_v13, %v933_v14 }
 0x736   :  { %937 = vrot.lane.b32.xlu1 %v935_v15, %s3240_s5 }
 0x7a0   :  { %v831_v20 = vpop.permute.xlu0 %830 }
 0x7a1   :  { %v3710_v22 = vadd.f32 %v831_v20, %v823_v17 }
 0x7a3   :  { %3127 = vtanh.f32 %v3710_v22 }
 0x7a8   :  { %v938_v28 = vpop.permute.xlu1 %937 }
 0x7a9   :  { %v3714_v29 = vadd.f32 %v938_v28, %v930_v27 }
 0x7ab   :  { %3129 = vtanh.f32 %v3714_v29  ;;  %v1148_v17 = vrot.slane %v3714_v29, 2 }
 0x7ad   :  { %v3128_v30 = vpop.eup %3127 }
 0x7ae   :  { %836 = vrot.lane.b32.xlu0 %v3128_v30, %s3239_s4 }
 0x7b5   :  { %v3130_v31 = vpop.eup %3129 }
 0x7b6   :  { %943 = vrot.lane.b32.xlu1 %v3130_v31, %s3239_s4 }
 0x820   :  { %v837_v32 = vpop.permute.xlu0 %836 }
 0x821   :  { %v839_v33 = vmul.f32 %v3124_v9, %v837_v32 }
 0x823   :  { %v948_v36 = vrot.slane %v839_v33, 4 }
 0x825   :  { %v3723_v37 = vadd.f32 %v948_v36, %v727_v34  ;;  %v3725_v38 = vmax.f32 %v732_v35, %v948_v36  ;;  %957 = vrot.lane.b32.xlu0 %v948_v36, %s3240_s5 }
 0x828   :  { %v944_v40 = vpop.permute.xlu1 %943 }
 0x829   :  { %v946_v41 = vmul.f32 %v3126_v13, %v944_v40  ;;  %v1044_v13 = vrot.slane %v3710_v22, 6 }
 0x82b   :  { %v952_v46 = vrot.slane %v946_v41, 4  ;;  %v1063_v47 = vrot.slane %v946_v41, 2 }
 0x82d   :  { %v3731_v49 = vadd.f32 %v952_v46, %v731_v43  ;;  %v3733_v53 = vmax.f32 %v733_v45, %v952_v46  ;;  %1064 = vrot.lane.b32.xlu1 %v1063_v47, %s3240_s5 }
 0x897   :  { %v958_v42 = vpop.permute.xlu0 %957 }
 0x898   :  { %2712 = vmatmul.mubr.msk.f32.vlgmr.msra.gmra.mrb[12].mxu1 %vm296_vm5, %v958_v42 }
 0x899   :  { %2990 = vmatpush3.bf16.msra.mxu1 %v3442_v2  ;;  %2722 = vmatprep.mubr.msk.f32.mxu1 %vm3236_vm0, %v3237_v8 }
 0x89a   :  { %2991 = vmatprep.subr.bf16.mxu1 %v3235_v7 }
 0x89d   :  { %2993 = vmatpush3.bf16.msra.mxu1 %v3459_v11 }
 0x89e   :  { %2994 = vmatprep.subr.bf16.mxu1 %v3235_v7 }
 0x89f   :  { %v1065_v55 = vpop.permute.xlu1 %1064 }
 0x8a0   :  { %2723 = vmatmul.mubr.msk.f32.vlgmr.msra.gmra.mrb[14].mxu1 %vm296_vm5, %v1065_v55 }
 0x8a1   :  { %2996 = vmatpush3.bf16.msra.mxu1 %v3399_v48  ;;  %2733 = vmatprep.mubr.msk.f32.mxu1 %vm3236_vm0, %v3237_v8 }
 0x8a2   :  { %2997 = vmatprep.subr.bf16.mxu1 %v3235_v7 }
 0x8a5   :  { %2999 = vmatpush3.bf16.msra.mxu1 %v3421_v57 }
 0x8a6   :  { %3000 = vmatprep.subr.bf16.mxu1 %v3235_v7 }
 0x96b   :  { %v1027_v44 = vpop.f32.mrb[12].mxu1 }
 0x96c   :  { %v1032_v50 = vrot.slane %v1027_v44, 2  ;;  %v2713_v51 = vpop.f32.mrb[13].mxu1 }
 0x96e   :  { %v1034_v52 = vadd.f32 %v1032_v50, %v3605_v18 }
 0x970   :  { %v1035_v54 = vadd.f32 %v3610_v19, %v1034_v52 }
 0x972   :  { %3131 = vtanh.f32 %v1035_v54  ;;  %v2506_v63 = vmul.f32 -1.442695, %v1035_v54 }
 0x973   :  { %v1134_v56 = vpop.f32.mrb[14].mxu1 }
 0x974   :  { %v1138_v58 = vadd.f32 %v1134_v56, %v3618_v25  ;;  %v2724_v59 = vpop.f32.mrb[15].mxu1 }
 0x976   :  { %v1139_v60 = vadd.f32 %v3623_v26, %v1138_v58 }
 0x978   :  { %3133 = vtanh.f32 %v1139_v60  ;;  %v2508_v0 = vmul.f32 -1.442695, %v1139_v60 }
 0x979   :  { %3135 = vpow2.f32 %v2506_v63 }
 0x97a   :  { %3137 = vpow2.f32 %v2508_v0 }
 0x97c   :  { %v3132_v61 = vpop.eup %3131 }
 0x97d   :  { %1048 = vrot.lane.b32.xlu0 %v3132_v61, %s3239_s4 }
 0x982   :  { %v3134_v62 = vpop.eup %3133 }
 0x983   :  { %1152 = vrot.lane.b32.xlu1 %v3134_v62, %s3239_s4  ;;  %v3136_v18 = vpop.eup %3135 }
 0x984   :  { %v1039_v1 = vadd.f32 1.0, %v3136_v18  ;;  %v3138_v3 = vpop.eup %3137 }
 0x985   :  { %v1143_v4 = vadd.f32 1.0, %v3138_v3 }
 0x986   :  { %3139 = vrcp.f32 %v1039_v1 }
 0x987   :  { %3141 = vrcp.f32 %v1143_v4 }
 0x990   :  { %v3140_v25 = vpop.eup %3139 }
 0x991   :  { %v3142_v9 = vpop.eup %3141  ;;  %v1046_v14 = vmul.f32 %v3140_v25, %v1044_v13 }
 0x992   :  { %v1150_v20 = vmul.f32 %v3142_v9, %v1148_v17 }
 0x9ef   :  { %v1049_v5 = vpop.permute.xlu0 %1048 }
 0x9f0   :  { %v1051_v6 = vmul.f32 %v3140_v25, %v1049_v5 }
 0x9f2   :  { %1053 = vrot.lane.b32.xlu0 %v1051_v6, %s3240_s5 }
 0x9f5   :  { %v1153_v10 = vpop.permute.xlu1 %1152 }
 0x9f6   :  { %v1155_v12 = vmul.f32 %v3142_v9, %v1153_v10 }
 0x9f8   :  { %1157 = vrot.lane.b32.xlu1 %v1155_v12, %s3240_s5 }
 0xa64   :  { %v1054_v15 = vpop.permute.xlu0 %1053 }
 0xa65   :  { %v3759_v16 = vadd.f32 %v1054_v15, %v1046_v14 }
 0xa67   :  { %3143 = vtanh.f32 %v3759_v16  ;;  %v1261_v3 = vrot.slane %v3759_v16, 6 }
 0xa6a   :  { %v1158_v23 = vpop.permute.xlu1 %1157 }
 0xa6b   :  { %v3763_v27 = vadd.f32 %v1158_v23, %v1150_v20 }
 0xa6d   :  { %3145 = vtanh.f32 %v3763_v27  ;;  %v1367_v6 = vrot.slane %v3763_v27, 2 }
 0xa71   :  { %v3144_v28 = vpop.eup %3143 }
 0xa72   :  { %1059 = vrot.lane.b32.xlu0 %v3144_v28, %s3239_s4 }
 0xa77   :  { %v3146_v30 = vpop.eup %3145 }
 0xa78   :  { %1163 = vrot.lane.b32.xlu1 %v3146_v30, %s3239_s4 }
 0xae4   :  { %v1060_v22 = vpop.permute.xlu0 %1059 }
 0xae5   :  { %v1062_v31 = vmul.f32 %v3140_v25, %v1060_v22 }
 0xae7   :  { %v3768_v32 = vrot.slane %v1062_v31, 6 }
 0xae9   :  { %v3772_v29 = vadd.f32 %v3768_v32, %v3723_v37  ;;  %v1175_v33 = vmax.f32 %v3725_v38, %v3768_v32  ;;  %1177 = vrot.lane.b32.xlu0 %v3768_v32, %s3240_s5 }
 0xaea   :  { %v1164_v34 = vpop.permute.xlu1 %1163 }
 0xaeb   :  { %v1166_v35 = vmul.f32 %v3142_v9, %v1164_v34 }
 0xaed   :  { %v1172_v36 = vrot.slane %v1166_v35, 2  ;;  %1280 = vrot.lane.b32.xlu1 %v1166_v35, %s3240_s5 }
 0xaef   :  { %v3780_v39 = vadd.f32 %v1172_v36, %v3731_v49  ;;  %v3783_v40 = vmax.f32 %v3733_v53, %v1172_v36 }
 0xb5b   :  { %v1178_v41 = vpop.permute.xlu0 %1177 }
 0xb5c   :  { %2734 = vmatmul.mubr.msk.f32.vlgmr.msra.gmra.mrb[16].mxu1 %vm296_vm5, %v1178_v41 }
 0xb5d   :  { %3002 = vmatpush3.bf16.msra.mxu1 %v3442_v2  ;;  %2744 = vmatprep.mubr.msk.f32.mxu1 %vm3236_vm0, %v3237_v8 }
 0xb5e   :  { %3003 = vmatprep.subr.bf16.mxu1 %v3235_v7 }
 0xb5f   :  { %v1281_v37 = vpop.permute.xlu1 %1280 }
 0xb61   :  { %3005 = vmatpush3.bf16.msra.mxu1 %v3459_v11 }
 0xb62   :  { %3012 = vmatprep.subr.bf16.mxu1 %v3235_v7 }
 0xb64   :  { %2745 = vmatmul.mubr.msk.f32.vlgmr.msra.gmra.mrb[18].mxu1 %vm296_vm5, %v1281_v37 }
 0xb65   :  { %3014 = vmatpush3.bf16.msra.mxu1 %v3442_v2  ;;  %2766 = vmatprep.mubr.msk.f32.mxu1 %vm3236_vm0, %v3237_v8 }
 0xb66   :  { %3015 = vmatprep.subr.bf16.mxu1 %v3235_v7 }
 0xb69   :  { %3017 = vmatpush3.bf16.msra.mxu1 %v3459_v11 }
 0xb6a   :  { %3024 = vmatprep.subr.bf16.mxu1 %v3235_v7 }
 0xc2f   :  { %v1247_v43 = vpop.f32.mrb[16].mxu1 }
 0xc30   :  { %v1251_v45 = vadd.f32 %v1247_v43, %v3616_v24  ;;  %v2735_v46 = vpop.f32.mrb[17].mxu1 }
 0xc32   :  { %v1252_v47 = vadd.f32 %v3610_v19, %v1251_v45 }
 0xc34   :  { %3147 = vtanh.f32 %v1252_v47  ;;  %v2510_v52 = vmul.f32 -1.442695, %v1252_v47 }
 0xc37   :  { %v1350_v49 = vpop.f32.mrb[18].mxu1 }
 0xc38   :  { %v1355_v53 = vrot.slane %v1350_v49, 2  ;;  %v2746_v42 = vpop.f32.mrb[19].mxu1 }
 0xc3a   :  { %v1357_v55 = vadd.f32 %v1355_v53, %v3613_v21 }
 0xc3c   :  { %v1358_v44 = vadd.f32 %v3623_v26, %v1357_v55 }
 0xc3e   :  { %v3148_v50 = vpop.eup %3147  ;;  %3149 = vtanh.f32 %v1358_v44  ;;  %v2512_v54 = vmul.f32 -1.442695, %v1358_v44 }
 0xc3f   :  { %1265 = vrot.lane.b32.xlu1 %v3148_v50, %s3239_s4  ;;  %3151 = vpow2.f32 %v2510_v52 }
 0xc40   :  { %3153 = vpow2.f32 %v2512_v54 }
 0xc48   :  { %v3150_v51 = vpop.eup %3149 }
 0xc49   :  { %1371 = vrot.lane.b32.xlu0 %v3150_v51, %s3239_s4  ;;  %v3152_v56 = vpop.eup %3151 }
 0xc4a   :  { %v1256_v58 = vadd.f32 1.0, %v3152_v56  ;;  %v3154_v59 = vpop.eup %3153 }
 0xc4b   :  { %v1362_v60 = vadd.f32 1.0, %v3154_v59 }
 0xc4c   :  { %3155 = vrcp.f32 %v1256_v58 }
 0xc4d   :  { %3157 = vrcp.f32 %v1362_v60 }
 0xc56   :  { %v3156_v61 = vpop.eup %3155 }
 0xc57   :  { %v3158_v0 = vpop.eup %3157  ;;  %v1263_v4 = vmul.f32 %v3156_v61, %v1261_v3 }
 0xc58   :  { %v1369_v9 = vmul.f32 %v3158_v0, %v1367_v6 }
 0xcb1   :  { %v1266_v62 = vpop.permute.xlu1 %1265 }
 0xcb2   :  { %v1268_v63 = vmul.f32 %v3156_v61, %v1266_v62 }
 0xcb4   :  { %1270 = vrot.lane.b32.xlu1 %v1268_v63, %s3240_s5 }
 0xcbb   :  { %v1372_v18 = vpop.permute.xlu0 %1371 }
 0xcbc   :  { %v1374_v1 = vmul.f32 %v3158_v0, %v1372_v18 }
 0xcbe   :  { %1376 = vrot.lane.b32.xlu0 %v1374_v1, %s3240_s5 }
 0xd26   :  { %v1271_v25 = vpop.permute.xlu1 %1270 }
 0xd27   :  { %v3808_v5 = vadd.f32 %v1271_v25, %v1263_v4 }
 0xd29   :  { %3159 = vtanh.f32 %v3808_v5  ;;  %v1478_v59 = vrot.slane %v3808_v5, 6 }
 0xd30   :  { %v1377_v10 = vpop.permute.xlu0 %1376 }
 0xd31   :  { %v3812_v12 = vadd.f32 %v1377_v10, %v1369_v9 }
 0xd33   :  { %v3160_v13 = vpop.eup %3159  ;;  %3161 = vtanh.f32 %v3812_v12  ;;  %v1586_v63 = vrot.slane %v3812_v12, 2 }
 0xd34   :  { %1276 = vrot.lane.b32.xlu1 %v3160_v13, %s3239_s4 }
 0xd3d   :  { %v3162_v14 = vpop.eup %3161 }
 0xd3e   :  { %1382 = vrot.lane.b32.xlu0 %v3162_v14, %s3239_s4 }
 0xda6   :  { %v1277_v15 = vpop.permute.xlu1 %1276 }
 0xda7   :  { %v1279_v16 = vmul.f32 %v3156_v61, %v1277_v15 }
 0xda9   :  { %v3818_v17 = vadd.f32 %v1279_v16, %v3772_v29  ;;  %v3823_v20 = vmax.f32 %v1175_v33, %v1279_v16  ;;  %1391 = vrot.lane.b32.xlu1 %v1279_v16, %s3240_s5 }
 0xdb0   :  { %v1383_v23 = vpop.permute.xlu0 %1382 }
 0xdb1   :  { %v3826_v27 = vmul.f32 %v3158_v0, %v1383_v23 }
 0xdb3   :  { %v3830_v28 = vadd.f32 %v3826_v27, %v3780_v39  ;;  %v1389_v30 = vmax.f32 %v3783_v40, %v3826_v27  ;;  %v1498_v22 = vrot.slane %v3826_v27, 6 }
 0xdb5   :  { %1499 = vrot.lane.b32.xlu0 %v1498_v22, %s3240_s5 }
 0xe1b   :  { %v1392_v31 = vpop.permute.xlu1 %1391 }
 0xe1c   :  { %2756 = vmatmul.mubr.msk.f32.vlgmr.msra.gmra.mrb[4].mxu0 %vm296_vm5, %v1392_v31 }
 0xe1d   :  { %3020 = vmatpush3.bf16.msra.mxu0 %v3399_v48  ;;  %2777 = vmatprep.mubr.msk.f32.mxu0 %vm3236_vm0, %v3237_v8 }
 0xe1e   :  { %3021 = vmatprep.subr.bf16.mxu0 %v3235_v7 }
 0xe21   :  { %3023 = vmatpush3.bf16.msra.mxu0 %v3421_v57 }
 0xe22   :  { %3030 = vmatprep.subr.bf16.mxu0 %v3235_v7 }
 0xe27   :  { %v1500_v38 = vpop.permute.xlu0 %1499 }
 0xe28   :  { %2767 = vmatmul.mubr.msk.f32.vlgmr.msra.gmra.mrb[20].mxu1 %vm296_vm5, %v1500_v38 }
 0xe29   :  { %3026 = vmatpush3.bf16.msra.mxu1 %v3442_v2  ;;  %2788 = vmatprep.mubr.msk.f32.mxu1 %vm3236_vm0, %v3237_v8 }
 0xe2a   :  { %3027 = vmatprep.subr.bf16.mxu1 %v3235_v7 }
 0xe2d   :  { %3029 = vmatpush3.bf16.msra.mxu1 %v3459_v11 }
 0xe2e   :  { %3036 = vmatprep.subr.bf16.mxu1 %v3235_v7 }
 0xeef   :  { %v1461_v32 = vpop.f32.mrb[4].mxu0 }
 0xef0   :  { %v1466_v29 = vrot.slane %v1461_v32, 6  ;;  %v2757_v33 = vpop.f32.mrb[5].mxu0 }
 0xef2   :  { %v1468_v34 = vadd.f32 %v1466_v29, %v3616_v24 }
 0xef4   :  { %v1469_v35 = vadd.f32 %v3610_v19, %v1468_v34 }
 0xef6   :  { %3163 = vtanh.f32 %v1469_v35  ;;  %v2514_v47 = vmul.f32 -1.442695, %v1469_v35 }
 0xefb   :  { %v1569_v36 = vpop.f32.mrb[20].mxu1 }
 0xefc   :  { %v1574_v39 = vrot.slane %v1569_v36, 4  ;;  %v2768_v41 = vpop.f32.mrb[21].mxu1 }
 0xefe   :  { %v1576_v37 = vadd.f32 %v1574_v39, %v3613_v21 }
 0xf00   :  { %v3164_v43 = vpop.eup %3163  ;;  %v1577_v45 = vadd.f32 %v3623_v26, %v1576_v37 }
 0xf01   :  { %1482 = vrot.lane.b32.xlu1 %v3164_v43, %s3239_s4 }
 0xf02   :  { %3165 = vtanh.f32 %v1577_v45  ;;  %v2516_v49 = vmul.f32 -1.442695, %v1577_v45 }
 0xf03   :  { %3167 = vpow2.f32 %v2514_v47 }
 0xf04   :  { %3169 = vpow2.f32 %v2516_v49 }
 0xf0c   :  { %v3166_v46 = vpop.eup %3165 }
 0xf0d   :  { %1590 = vrot.lane.b32.xlu0 %v3166_v46, %s3239_s4  ;;  %v3168_v53 = vpop.eup %3167 }
 0xf0e   :  { %v1473_v42 = vadd.f32 1.0, %v3168_v53  ;;  %v3170_v55 = vpop.eup %3169 }
 0xf0f   :  { %v1581_v44 = vadd.f32 1.0, %v3170_v55 }
 0xf10   :  { %3171 = vrcp.f32 %v1473_v42 }
 0xf11   :  { %3173 = vrcp.f32 %v1581_v44 }
 0xf1a   :  { %v3172_v50 = vpop.eup %3171 }
 0xf1b   :  { %v3174_v54 = vpop.eup %3173  ;;  %v1480_v60 = vmul.f32 %v3172_v50, %v1478_v59 }
 0xf1c   :  { %v1588_v0 = vmul.f32 %v3174_v54, %v1586_v63 }
 0xf73   :  { %v1483_v51 = vpop.permute.xlu1 %1482 }
 0xf74   :  { %v1485_v52 = vmul.f32 %v3172_v50, %v1483_v51 }
 0xf76   :  { %1487 = vrot.lane.b32.xlu1 %v1485_v52, %s3240_s5 }
 0xf7f   :  { %v1591_v56 = vpop.permute.xlu0 %1590 }
 0xf80   :  { %v1593_v58 = vmul.f32 %v3174_v54, %v1591_v56 }
 0xf82   :  { %1595 = vrot.lane.b32.xlu0 %v1593_v58, %s3240_s5 }
 0xfe8   :  { %v1488_v61 = vpop.permute.xlu1 %1487 }
 0xfe9   :  { %v3859_v62 = vadd.f32 %v1488_v61, %v1480_v60 }
 0xfeb   :  { %3175 = vtanh.f32 %v3859_v62  ;;  %v1702_v53 = vrot.slane %v3859_v62, 6 }
 0xff4   :  { %v1596_v18 = vpop.permute.xlu0 %1595 }
 0xff5   :  { %v3176_v1 = vpop.eup %3175  ;;  %v3863_v3 = vadd.f32 %v1596_v18, %v1588_v0 }
 0xff6   :  { %1493 = vrot.lane.b32.xlu1 %v3176_v1, %s3239_s4 }
 0xff7   :  { %3177 = vtanh.f32 %v3863_v3 }
0x1001   :  { %v3178_v4 = vpop.eup %3177 }
0x1002   :  { %1601 = vrot.lane.b32.xlu0 %v3178_v4, %s3239_s4 }
0x1068   :  { %v1494_v25 = vpop.permute.xlu1 %1493 }
0x1069   :  { %v1496_v5 = vmul.f32 %v3172_v50, %v1494_v25  ;;  %v1809_v50 = vrot.slane %v3863_v3, 2 }
0x106b   :  { %v3868_v6 = vrot.slane %v1496_v5, 2 }
0x106d   :  { %v3872_v9 = vadd.f32 %v3868_v6, %v3818_v17  ;;  %v1613_v10 = vmax.f32 %v3823_v20, %v3868_v6  ;;  %1615 = vrot.lane.b32.xlu1 %v3868_v6, %s3240_s5 }
0x1074   :  { %v1602_v12 = vpop.permute.xlu0 %1601 }
0x1075   :  { %v1604_v13 = vmul.f32 %v3174_v54, %v1602_v12 }
0x1077   :  { %v1610_v14 = vrot.slane %v1604_v13, 6  ;;  %v1721_v15 = vrot.slane %v1604_v13, 4 }
0x1079   :  { %v3879_v16 = vadd.f32 %v1610_v14, %v3830_v28  ;;  %v3884_v23 = vmax.f32 %v1389_v30, %v1610_v14  ;;  %1722 = vrot.lane.b32.xlu0 %v1721_v15, %s3240_s5 }
0x10df   :  { %v1616_v17 = vpop.permute.xlu1 %1615 }
0x10e0   :  { %2778 = vmatmul.mubr.msk.f32.vlgmr.msra.gmra.mrb[6].mxu0 %vm296_vm5, %v1616_v17 }
0x10e1   :  { %3032 = vmatpush3.bf16.msra.mxu0 %v3399_v48  ;;  %2799 = vmatprep.mubr.msk.f32.mxu0 %vm3236_vm0, %v3237_v8 }
0x10e2   :  { %3033 = vmatprep.subr.bf16.mxu0 %v3235_v7 }
0x10e5   :  { %3035 = vmatpush3.bf16.msra.mxu0 %v3421_v57 }
0x10e6   :  { %3042 = vmatprep.subr.bf16.mxu0 %v3235_v7 }
0x10eb   :  { %v1723_v28 = vpop.permute.xlu0 %1722 }
0x10ec   :  { %2789 = vmatmul.mubr.msk.f32.vlgmr.msra.gmra.mrb[22].mxu1 %vm296_vm5, %v1723_v28 }
0x10ed   :  { %3038 = vmatpush3.bf16.msra.mxu1 %v3442_v2  ;;  %2810 = vmatprep.mubr.msk.f32.mxu1 %vm3236_vm0, %v3237_v8 }
0x10ee   :  { %3039 = vmatprep.subr.bf16.mxu1 %v3235_v7 }
0x10f1   :  { %3041 = vmatpush3.bf16.msra.mxu1 %v3459_v11 }
0x10f2   :  { %3048 = vmatprep.subr.bf16.mxu1 %v3235_v7 }
0x11b3   :  { %v1685_v48 = vpop.f32.mrb[6].mxu0 }
0x11b4   :  { %v1690_v40 = vrot.slane %v1685_v48, 4  ;;  %v2779_v27 = vpop.f32.mrb[7].mxu0 }
0x11b6   :  { %v1692_v57 = vadd.f32 %v1690_v40, %v3616_v24 }
0x11b8   :  { %v1693_v30 = vadd.f32 %v3610_v19, %v1692_v57 }
0x11ba   :  { %3179 = vtanh.f32 %v1693_v30  ;;  %v2518_v33 = vmul.f32 -1.442695, %v1693_v30 }
0x11bf   :  { %v1792_v22 = vpop.f32.mrb[22].mxu1 }
0x11c0   :  { %v1797_v31 = vrot.slane %v1792_v22, 6  ;;  %v2790_v2 = vpop.f32.mrb[23].mxu1 }
0x11c2   :  { %v1799_v38 = vadd.f32 %v1797_v31, %v3613_v21 }
0x11c4   :  { %v3180_v32 = vpop.eup %3179  ;;  %v1800_v29 = vadd.f32 %v3623_v26, %v1799_v38 }
0x11c5   :  { %1706 = vrot.lane.b32.xlu1 %v3180_v32, %s3239_s4 }
0x11c6   :  { %3181 = vtanh.f32 %v1800_v29  ;;  %v2520_v34 = vmul.f32 -1.442695, %v1800_v29 }
0x11c7   :  { %3183 = vpow2.f32 %v2518_v33 }
0x11c8   :  { %3185 = vpow2.f32 %v2520_v34 }
0x11d0   :  { %v3182_v11 = vpop.eup %3181 }
0x11d1   :  { %1813 = vrot.lane.b32.xlu0 %v3182_v11, %s3239_s4  ;;  %v3184_v35 = vpop.eup %3183 }
0x11d2   :  { %v1697_v36 = vadd.f32 1.0, %v3184_v35  ;;  %v3186_v39 = vpop.eup %3185 }
0x11d3   :  { %v1804_v41 = vadd.f32 1.0, %v3186_v39 }
0x11d4   :  { %3187 = vrcp.f32 %v1697_v36 }
0x11d5   :  { %3189 = vrcp.f32 %v1804_v41 }
0x11de   :  { %v3188_v37 = vpop.eup %3187 }
0x11df   :  { %v3190_v46 = vpop.eup %3189  ;;  %v1704_v42 = vmul.f32 %v3188_v37, %v1702_v53  ;;  %v2064_v53 = vld [vmem:[%s4064_s6 + $0x20] sm:$0xff] }
0x11e0   :  { %v1811_v51 = vmul.f32 %v3190_v46, %v1809_v50 }
0x1237   :  { %v1707_v43 = vpop.permute.xlu1 %1706 }
0x1238   :  { %v1709_v45 = vmul.f32 %v3188_v37, %v1707_v43  ;;  %v2061_v43 = vld [vmem:[%s4064_s6 + $0x8] sm:$0xff] }
0x123a   :  { %1711 = vrot.lane.b32.xlu1 %v1709_v45, %s3240_s5  ;;  %v2062_v45 = vld [vmem:[%s4064_s6 + $0x10] sm:$0xff] }
0x1243   :  { %v1814_v47 = vpop.permute.xlu0 %1813 }
0x1244   :  { %v1816_v49 = vmul.f32 %v3190_v46, %v1814_v47  ;;  %v2063_v47 = vld [vmem:[%s4064_s6 + $0x18] sm:$0xff] }
0x1246   :  { %1818 = vrot.lane.b32.xlu0 %v1816_v49, %s3240_s5  ;;  %v3052_v49 = vpack.c.bf16 %v2063_v47, %v2062_v45 }
0x12ac   :  { %v1712_v55 = vpop.permute.xlu1 %1711 }
0x12ad   :  { %v3910_v44 = vadd.f32 %v1712_v55, %v1704_v42  ;;  %v2065_v42 = vld [vmem:[%s4064_s6 + $0x28] sm:$0xff] }
0x12ae   :  { %v3043_v55 = vpack.c.bf16 %v2065_v42, %v2064_v53 }
0x12af   :  { %3191 = vtanh.f32 %v3910_v44  ;;  %v1925_v38 = vrot.slane %v3910_v44, 6 }
0x12b8   :  { %v1819_v52 = vpop.permute.xlu0 %1818 }
0x12b9   :  { %v3192_v54 = vpop.eup %3191  ;;  %v3914_v56 = vadd.f32 %v1819_v52, %v1811_v51  ;;  %v2066_v51 = vld [vmem:[%s4064_s6 + $0x30] sm:$0xff]  ;;  %v2067_v52 = vld [vmem:[%s4064_s6 + $0x38] sm:$0xff] }
0x12ba   :  { %1717 = vrot.lane.b32.xlu1 %v3192_v54, %s3239_s4  ;;  %v3046_v54 = vpack.c.bf16 %v2067_v52, %v2066_v51 }
0x12bb   :  { %3193 = vtanh.f32 %v3914_v56  ;;  %v2029_v33 = vrot.slane %v3914_v56, 2 }
0x12c5   :  { %v3194_v58 = vpop.eup %3193 }
0x12c6   :  { %1824 = vrot.lane.b32.xlu0 %v3194_v58, %s3239_s4 }
0x132c   :  { %v1718_v59 = vpop.permute.xlu1 %1717 }
0x132d   :  { %v1720_v60 = vmul.f32 %v3188_v37, %v1718_v59  ;;  %v2060_v37 = vld [vmem:[%s4064_s6] sm:$0xff] }
0x132f   :  { %v1829_v61 = vrot.slane %v1720_v60, 4 }
0x1331   :  { %1838 = vrot.lane.b32.xlu1 %v1829_v61, %s3240_s5  ;;  %v3921_v62 = vadd.f32 %v1829_v61, %v3872_v9  ;;  %v3926_v63 = vmax.f32 %v1613_v10, %v1829_v61 }
0x1338   :  { %v1825_v0 = vpop.permute.xlu0 %1824 }
0x1339   :  { %v1827_v18 = vmul.f32 %v3190_v46, %v1825_v0  ;;  %v3049_v46 = vpack.c.bf16 %v2061_v43, %v2060_v37 }
0x133b   :  { %v1833_v1 = vrot.slane %v1827_v18, 4  ;;  %v1944_v3 = vrot.slane %v1827_v18, 2 }
0x133d   :  { %v3929_v4 = vadd.f32 %v1833_v1, %v3879_v16  ;;  %v3932_v25 = vmax.f32 %v3884_v23, %v1833_v1  ;;  %1945 = vrot.lane.b32.xlu0 %v1944_v3, %s3240_s5 }
0x13a3   :  { %v1839_v5 = vpop.permute.xlu1 %1838 }
0x13a4   :  { %2800 = vmatmul.mubr.msk.f32.vlgmr.msra.gmra.mrb[8].mxu0 %vm296_vm5, %v1839_v5 }
0x13a5   :  { %2821 = vmatprep.mubr.msk.f32.mxu0 %vm3236_vm0, %v3237_v8  ;;  %3044 = vmatpush3.bf16.msra.mxu0 %v3043_v55 }
0x13a6   :  { %3045 = vmatprep.subr.bf16.mxu0 %v3235_v7 }
0x13a9   :  { %3047 = vmatpush3.bf16.msra.mxu0 %v3046_v54 }
0x13aa   :  { %3054 = vmatprep.subr.bf16.mxu0 %v3235_v7 }
0x13af   :  { %v1946_v20 = vpop.permute.xlu0 %1945 }
0x13b0   :  { %2811 = vmatmul.mubr.msk.f32.vlgmr.msra.gmra.mrb[24].mxu1 %vm296_vm5, %v1946_v20 }
0x13b1   :  { %2832 = vmatprep.mubr.msk.f32.mxu1 %vm3236_vm0, %v3237_v8  ;;  %3050 = vmatpush3.bf16.msra.mxu1 %v3049_v46 }
0x13b2   :  { %3051 = vmatprep.subr.bf16.mxu1 %v3235_v7 }
0x13b5   :  { %3053 = vmatpush3.bf16.msra.mxu1 %v3052_v49 }
0x13b6   :  { %3060 = vmatprep.subr.bf16.mxu1 %v3235_v7 }
0x1477   :  { %v1908_v6 = vpop.f32.mrb[8].mxu0 }
0x1478   :  { %v1913_v9 = vrot.slane %v1908_v6, 2  ;;  %v2801_v10 = vpop.f32.mrb[9].mxu0  ;;  %v2299_v6 = vld [vmem:[%s4064_s6 + $0x60] sm:$0xff] }
0x1479   :  { %v2302_v10 = vld [vmem:[%s4064_s6 + $0x78] sm:$0xff] }
0x147a   :  { %v1915_v12 = vadd.f32 %v1913_v9, %v3616_v24  ;;  %v2301_v9 = vld [vmem:[%s4064_s6 + $0x70] sm:$0xff] }
0x147c   :  { %v1916_v13 = vadd.f32 %v3610_v19, %v1915_v12  ;;  %v3064_v12 = vpack.c.bf16 %v2302_v10, %v2301_v9 }
0x147e   :  { %3195 = vtanh.f32 %v1916_v13  ;;  %v2522_v48 = vmul.f32 -1.442695, %v1916_v13  ;;  %v2219_v13 = vld [vmem:[%s4064_s6 + $0x40] sm:$0xff] }
0x1483   :  { %v2015_v14 = vpop.f32.mrb[24].mxu1 }
0x1484   :  { %v2019_v15 = vadd.f32 %v2015_v14, %v3613_v21  ;;  %v2812_v16 = vpop.f32.mrb[25].mxu1  ;;  %v2220_v14 = vld [vmem:[%s4064_s6 + $0x48] sm:$0xff] }
0x1485   :  { %v3055_v16 = vpack.c.bf16 %v2220_v14, %v2219_v13 }
0x1486   :  { %v2020_v23 = vadd.f32 %v3623_v26, %v2019_v15 }
0x1488   :  { %v3196_v17 = vpop.eup %3195  ;;  %3197 = vtanh.f32 %v2020_v23  ;;  %v2524_v40 = vmul.f32 -1.442695, %v2020_v23  ;;  %v2221_v23 = vld [vmem:[%s4064_s6 + $0x50] sm:$0xff] }
0x1489   :  { %1929 = vrot.lane.b32.xlu1 %v3196_v17, %s3239_s4  ;;  %3199 = vpow2.f32 %v2522_v48  ;;  %v2222_v17 = vld [vmem:[%s4064_s6 + $0x58] sm:$0xff] }
0x148a   :  { %3201 = vpow2.f32 %v2524_v40  ;;  %v3058_v48 = vpack.c.bf16 %v2222_v17, %v2221_v23 }
0x1492   :  { %v3198_v28 = vpop.eup %3197 }
0x1493   :  { %2033 = vrot.lane.b32.xlu0 %v3198_v28, %s3239_s4  ;;  %v3200_v24 = vpop.eup %3199 }
0x1494   :  { %v1920_v19 = vadd.f32 1.0, %v3200_v24  ;;  %v3202_v27 = vpop.eup %3201  ;;  %v2389_v24 = vld [vmem:[%s4066_s8] sm:$0xff] }
0x1495   :  { %v2024_v57 = vadd.f32 1.0, %v3202_v27 }
0x1496   :  { %3203 = vrcp.f32 %v1920_v19  ;;  %v2390_v19 = vld [vmem:[%s4066_s8 + $0x8] sm:$0xff] }
0x1497   :  { %3205 = vrcp.f32 %v2024_v57  ;;  %v3067_v27 = vpack.c.bf16 %v2390_v19, %v2389_v24  ;;  %v2391_v57 = vld [vmem:[%s4066_s8 + $0x10] sm:$0xff] }
0x14a0   :  { %v3204_v21 = vpop.eup %3203 }
0x14a1   :  { %v3206_v22 = vpop.eup %3205  ;;  %v1927_v32 = vmul.f32 %v3204_v21, %v1925_v38 }
0x14a2   :  { %v2031_v34 = vmul.f32 %v3206_v22, %v2029_v33  ;;  %v2529_v33 = vld [vmem:[%s4065_s7] ss:$0 sm:$0xff] }
0x14fb   :  { %v1930_v30 = vpop.permute.xlu1 %1929 }
0x14fc   :  { %v1932_v26 = vmul.f32 %v3204_v21, %v1930_v30 }
0x14fe   :  { %1934 = vrot.lane.b32.xlu1 %v1932_v26, %s3240_s5 }
0x1505   :  { %v2034_v31 = vpop.permute.xlu0 %2033 }
0x1506   :  { %v2036_v2 = vmul.f32 %v3206_v22, %v2034_v31 }
0x1508   :  { %2038 = vrot.lane.b32.xlu0 %v2036_v2, %s3240_s5 }
0x1570   :  { %v1935_v29 = vpop.permute.xlu1 %1934 }
0x1571   :  { %v1937_v11 = vadd.f32 %v1935_v29, %v1927_v32 }
0x1573   :  { %3207 = vtanh.f32 %v1937_v11 }
0x157a   :  { %v2039_v35 = vpop.permute.xlu0 %2038 }
0x157b   :  { %v2041_v36 = vadd.f32 %v2039_v35, %v2031_v34 }
0x157d   :  { %v3208_v39 = vpop.eup %3207  ;;  %3209 = vtanh.f32 %v2041_v36 }
0x157e   :  { %1940 = vrot.lane.b32.xlu1 %v3208_v39, %s3239_s4  ;;  %v2530_v39 = vld [vmem:[%s4067_s9] ss:$0 sm:$0xff] }
0x1587   :  { %v3210_v41 = vpop.eup %3209 }
0x1588   :  { %2044 = vrot.lane.b32.xlu0 %v3210_v41, %s3239_s4 }
0x15f0   :  { %v1941_v44 = vpop.permute.xlu1 %1940 }
0x15f1   :  { %v1943_v50 = vmul.f32 %v3204_v21, %v1941_v44 }
0x15f3   :  { %v2049_v56 = vrot.slane %v1943_v50, 6 }
0x15f5   :  { %v2051_v58 = vadd.f32 %v2049_v56, %v3921_v62  ;;  %v2056_v62 = vmax.f32 %v3926_v63, %v2049_v56 }
0x15f7   :  { %v2058_v59 = vmul.f32 0.125, %v2051_v58 }
0x15f9   :  { %2145 = vrot.lane.b32.xlu1 %v2058_v59, %s3240_s5 }
0x15fa   :  { %v2045_v60 = vpop.permute.xlu0 %2044 }
0x15fb   :  { %v2047_v61 = vmul.f32 %v3206_v22, %v2045_v60 }
0x15fd   :  { %v2053_v0 = vrot.slane %v2047_v61, 2 }
0x15ff   :  { %v2055_v18 = vadd.f32 %v2053_v0, %v3929_v4  ;;  %v2057_v1 = vmax.f32 %v3932_v25, %v2053_v0  ;;  %v2300_v4 = vld [vmem:[%s4064_s6 + $0x68] sm:$0xff] }
0x1600   :  { %v3061_v25 = vpack.c.bf16 %v2300_v4, %v2299_v6 }
0x1601   :  { %v2059_v3 = vmul.f32 0.125, %v2055_v18  ;;  %v2304_v5 = vrot.slane %v2057_v1, 6 }
0x1603   :  { %2305 = vrot.lane.b32.xlu1 %v2304_v5, %s3240_s5  ;;  %v2069_v20 = vrot.slane %v2059_v3, 6 }
0x1605   :  { %2070 = vrot.lane.b32.xlu0 %v2069_v20, %s3240_s5 }
0x1609   :  { %2224 = vrot.lane.b32.xlu0 %v2056_v62, %s3240_s5 }
0x166b   :  { %v2146_v63 = vpop.permute.xlu1 %2145 }
0x166c   :  { %2833 = vmatmul.mubr.msk.f32.vlgmr.msra.gmra.mrb[26].mxu1 %vm296_vm5, %v2146_v63 }
0x166d   :  { %3062 = vmatpush3.bf16.msra.mxu1 %v3061_v25  ;;  %2854 = vmatprep.mubr.msk.f32.mxu1 %vm3236_vm0, %v3237_v8 }
0x166e   :  { %3063 = vmatprep.subr.bf16.mxu1 %v3235_v7 }
0x1671   :  { %3065 = vmatpush3.bf16.msra.mxu1 %v3064_v12 }
0x1675   :  { %v2306_v15 = vpop.permute.xlu1 %2305 }
0x1676   :  { %2855 = vmatmul.mubr.msk.f32.vlgmr.msra.gmra.mrb[28].mxu1 %vm296_vm5, %v2306_v15 }
0x1677   :  { %v2071_v28 = vpop.permute.xlu0 %2070 }
0x1678   :  { %2822 = vmatmul.mubr.msk.f32.vlgmr.msra.gmra.mrb[10].mxu0 %vm296_vm5, %v2071_v28 }
0x1679   :  { %3056 = vmatpush3.bf16.msra.mxu0 %v3055_v16  ;;  %2843 = vmatprep.mubr.msk.f32.mxu0 %vm3236_vm0, %v3237_v8 }
0x167a   :  { %3057 = vmatprep.subr.bf16.mxu0 %v3235_v7 }
0x167b   :  { %v2225_v40 = vpop.permute.xlu0 %2224 }
0x167d   :  { %3059 = vmatpush3.bf16.msra.mxu0 %v3058_v48 }
0x167e   :  { %3066 = vmatprep.subr.bf16.mxu0 %v3235_v7 }
0x1680   :  { %2844 = vmatmul.mubr.msk.f32.vlgmr.msra.gmra.mrb[12].mxu0 %vm296_vm5, %v2225_v40 }
0x1681   :  { %2865 = vmatprep.mubr.msk.f32.mxu0 %vm3236_vm0, %v3237_v8  ;;  %3068 = vmatpush3.bf16.msra.mxu0 %v3067_v27  ;;  %v2392_v8 = vld [vmem:[%s4066_s8 + $0x18] sm:$0xff] }
0x1682   :  { %3069 = vmatprep.subr.bf16.mxu0 %v3235_v7  ;;  %v3070_v21 = vpack.c.bf16 %v2392_v8, %v2391_v57 }
0x1685   :  { %3071 = vmatpush3.bf16.msra.mxu0 %v3070_v21 }
0x173f   :  { %v2215_v30 = vpop.f32.mrb[26].mxu1 }
0x1740   :  { %v2834_v26 = vpop.f32.mrb[27].mxu1 }
0x1749   :  { %v2375_v22 = vpop.f32.mrb[28].mxu1 }
0x174a   :  { %v2856_v31 = vpop.f32.mrb[29].mxu1 }
0x174b   :  { %v2140_v2 = vpop.f32.mrb[10].mxu0 }
0x174c   :  { %v2216_v38 = vadd.f32 %v2215_v30, %v2140_v2  ;;  %v2823_v32 = vpop.f32.mrb[11].mxu0 }
0x1753   :  { %v2294_v29 = vpop.f32.mrb[12].mxu0 }
0x1754   :  { %v2298_v11 = vadd.f32 %v2294_v29, %v2216_v38  ;;  %v2845_v7 = vpop.f32.mrb[13].mxu0 }
0x1756   :  { %v2379_v34 = vadd.f32 %v2375_v22, %v2298_v11 }
0x1758   :  { %v2387_v35 = vadd.f32 %v2529_v33, %v2379_v34 }
0x175a   :  { %v2388_v36 = vmax.f32 %v2387_v35, 0.0 }
0x175c   :  { %2866 = vmatmul.mubr.msk.f32.vlgmr.msra.gmra.mrb[14].mxu0 %vm296_vm5, %v2388_v36 }
0x182f   :  { %v2469_v41 = vpop.f32.mrb[14].mxu0 }
0x1830   :  { %v2470_v37 = vadd.f32 %v2530_v39, %v2469_v41  ;;  %v2867_v43 = vpop.f32.mrb[15].mxu0 }
0x1832   :  { %2474 = vst.msk [vmem:[#allocation2] sm:$0x3] %vm2473_vm6, %v2470_v37 }
0x1833   :  { %3222 = shalt.err (!%p3219_p4)
}
0x1834   :  { %s3223_s23 = scalar_lea.hbm %s4068_s10, 32 }
0x1835   :  { %p3224_p5 = scmp.ne.s32.totalorder %s4068_s10, %s3223_s23  ;;  %p3227_p6 = scmp.lt.u32.totalorder %s3223_s23, %s4068_s10 }
0x1837   :  { %p3229_p7 = pnand %p3227_p6, %p3224_p5 }
0x1839   :  { %3232 = shalt.err (!%p3229_p7)
}
0x183a   :  { %2484 = dma.vmem_to_hbm [thread:$0]  %s2482_s21, 32, %s4068_s10, [#allocation3]  }
0x183b   :  { %3233 = dma.done.wait [#allocation3], 32  }
0x183c   :  { %3234 = vsyncadd [#allocation3], 4294967264 }
0x183d   :  { %2488 = vsyncpa [#allocation3], 1 }

</bundles_post_ra>
